<compile_context>
chip_gen: v7x
topology: tpu7x:2x2x1
jax: 0.10.0
libtpu: 0.0.40
codegen_flags: <defaults>
</compile_context>

<pallas_src>
from functools import partial

import jax
import jax.numpy as jnp
import numpy as np
from jax.experimental import pallas as pl
from jax.experimental.pallas import tpu as pltpu

EPS = 1e-5  # PyTorch GroupNorm default eps


# ----------------------------- static helpers ------------------------------ #

def _tap_masks(H, W, dtype):
    """(9, H*W) 0/1 masks, one per 3x3 tap (dh, dw), zeroing out-of-image taps.

    Lets SAME zero-padding be expressed as a lane roll on a (C, H*W) buffer plus
    a mask multiply instead of padded HBM copies + strided slices.  0/1 is exact
    in bf16, so the masks are stored directly in the matmul dtype."""
    hh = np.arange(H * W) // W
    ww = np.arange(H * W) % W
    rows = []
    for dh in (-1, 0, 1):
        for dw in (-1, 0, 1):
            valid = (hh + dh >= 0) & (hh + dh < H) & (ww + dw >= 0) & (ww + dw < W)
            rows.append(valid.astype(np.float32))
    return jnp.asarray(np.stack(rows), dtype=dtype)


def _group_avg_matrix(C, groups, HW):
    """(C, C) matrix mapping per-channel sums to per-channel group means
    (the 1/(cpg*H*W) factor is folded in)."""
    cpg = C // groups
    gid = np.arange(C) // cpg
    g = (gid[:, None] == gid[None, :]).astype(np.float32) / float(cpg * HW)
    return jnp.asarray(g)


def _pick_bt(B, per_image_bytes, budget_bytes, max_bt=8):
    """Largest divisor of B (<= max_bt) whose per-step footprint fits the budget."""
    for cand in range(min(B, max_bt), 0, -1):
        if B % cand == 0 and cand * per_image_bytes <= budget_bytes:
            return cand
    return 1


# ------------------------------ Pallas kernel ------------------------------- #

def _resnet_block_kernel(x_ref, masks_ref, w1_ref, b1_ref, ge1_ref, be1_ref,
                         w2_ref, b2_ref, g2_ref, bt2_ref, gmat_ref, *rest,
                         H, W, bt, has_res_conv, matmul_dtype):
    """Fused ResnetBlock forward for `bt` images of one grid step.

    Layout: channels in sublanes, flattened H*W in lanes, so the minor dim of
    every matmul result and of the output store is H*W (lane-dense).
      x_ref     : (bt, Cin, H*W)   io dtype
      masks_ref : (9, H*W)         matmul_dtype   per-tap zero-padding masks
      w1/w2     : (9, Cout, Cin')  matmul_dtype   tap-major conv weights
      b1/b2     : (Cout, 1)        f32            conv biases
      ge1/be1   : (B, Cout, 1)     f32            block1 GN affine with the
                                                  time-emb scale/shift folded in
      g2/bt2    : (Cout, 1)        f32            block2 GN gamma / beta
      gmat_ref  : (Cout, Cout)     f32            group-averaging matrix
      rest      : (rw, rb, out) if has_res_conv else (out,)
    """
    if has_res_conv:
        rw_ref, rb_ref, o_ref = rest
    else:
        (o_ref,) = rest

    f32 = jnp.float32
    HW = H * W

    # constants: loaded once per grid step, reused for all bt images.
    masks = masks_ref[...]                       # (9, HW)
    gmat = gmat_ref[...]                         # (Cout, Cout)
    b1, b2 = b1_ref[...], b2_ref[...]            # (Cout, 1)
    g2, bt2 = g2_ref[...], bt2_ref[...]          # (Cout, 1)
    w1_taps = [w1_ref[t] for t in range(9)]      # 9 x (Cout, Cin)
    w2_taps = [w2_ref[t] for t in range(9)]      # 9 x (Cout, Cout)
    if has_res_conv:
        rw, rb = rw_ref[...], rb_ref[...]        # (Cout, Cin), (Cout, 1)

    taps = [(dh, dw) for dh in (-1, 0, 1) for dw in (-1, 0, 1)]

    def conv3x3(v_mm, w_taps, bias):
        # 3x3 SAME conv on a lane-flattened (C, H*W) image: per tap, a static
        # lane roll (XLU) + 0/1 mask (zero padding, skipped for the centre tap)
        # + one K=C matmul accumulated in f32 on the MXU.  No (9*C, H*W) im2col
        # buffer is ever materialized.
        acc = None
        for t, (dh, dw) in enumerate(taps):
            d = dh * W + dw
            v_t = v_mm if d == 0 else pltpu.roll(v_mm, shift=(-d) % HW, axis=1)
            if d != 0:                                 # centre-tap mask is all ones
                v_t = v_t * masks[t:t + 1, :]
            p = jnp.dot(w_taps[t], v_t, preferred_element_type=f32)
            acc = p if acc is None else acc + p
        return acc + bias                              # (Cout, HW) f32

    def groupnorm_silu(acc, gamma, beta):
        # Two-pass GroupNorm: mean, then centred sum of squares -> var >= 0.
        # Channel sums use the (otherwise idle) XLU lane reduce; group averaging
        # is one tiny (Cout, Cout) matmul with 1/(cpg*H*W) folded in.
        sum_c = jnp.sum(acc, axis=1, keepdims=True)                   # (Cout, 1)
        mean = jnp.dot(gmat, sum_c, preferred_element_type=f32)       # (Cout, 1)
        diff = acc - mean
        ssq_c = jnp.sum(diff * diff, axis=1, keepdims=True)
        var = jnp.dot(gmat, ssq_c, preferred_element_type=f32)
        y = diff * jax.lax.rsqrt(var + EPS)
        y = y * gamma + beta          # GN affine (+ folded time-emb scale/shift)
        return y * jax.nn.sigmoid(y)  # SiLU

    base = pl.program_id(0) * bt
    for i in range(bt):               # static unroll over this step's images
        x_i = x_ref[i]                                 # (Cin, HW), io dtype
        x_mm = x_i.astype(matmul_dtype)                # cast ONCE; feeds conv1+res

        h = groupnorm_silu(conv3x3(x_mm, w1_taps, b1),
                           ge1_ref[base + i], be1_ref[base + i])
        h = groupnorm_silu(conv3x3(h.astype(matmul_dtype), w2_taps, b2), g2, bt2)

        if has_res_conv:                               # 1x1 conv (dim != dim_out)
            res = jnp.dot(rw, x_mm, preferred_element_type=f32) + rb
        else:                                          # nn.Identity residual
            res = x_i.astype(f32)
        o_ref[i] = (h + res).astype(o_ref.dtype)


# ------------------------------- JAX wrapper -------------------------------- #

def _const_spec(arr):
    nd = arr.ndim
    # NOTE: on JAX versions supporting it, add pipeline_mode=pl.Buffered(1) here
    # to single-buffer these constant operands (v7x VMEM win at large Cout).
    return pl.BlockSpec(arr.shape, lambda b, _nd=nd: (0,) * _nd)


def resnet_block_forward(x_nchw, params, time_emb=None, *, groups=8,
                         matmul_dtype=jnp.bfloat16):
    """ResnetBlock.forward.  x_nchw: (B, Cin, H, W); time_emb: (B, T) or None.

    Kernel I/O follows x_nchw.dtype (pass bf16 activations on v5e/v6e to halve
    HBM traffic for this memory-bound layer).  Matmul operands and the roll/mask
    tap math use `matmul_dtype` (bf16 = MXU fast path on v6e/v7x; on v5e, which
    has no bf16 VALU, prefer matmul_dtype=jnp.float32).  Conv accumulation,
    GroupNorm statistics, SiLU and the residual add are always f32."""
    f32 = jnp.float32
    B, Cin, H, W = x_nchw.shape
    HW = H * W
    Cout = params["w1"].shape[0]
    has_res = "rw" in params            # PyTorch: 1x1 conv iff dim != dim_out
    io_dtype = x_nchw.dtype
    io_bytes = jnp.dtype(io_dtype).itemsize
    mm_bytes = jnp.dtype(matmul_dtype).itemsize

    x2 = x_nchw.reshape(B, Cin, HW)     # channels -> sublanes, H*W -> lanes

    # time MLP (SiLU -> Linear) in plain jnp (XLA fuses this tiny op), then fold
    # (scale + 1, shift) into the block1 GroupNorm affine so the full-width
    # scale/shift step disappears from the kernel's VPU path.
    if time_emb is not None:
        te = time_emb.astype(f32)
        te = te * jax.nn.sigmoid(te)
        te = te @ params["mlp_w"].astype(f32).T + params["mlp_b"].astype(f32)
        scale, shift = te[:, :Cout], te[:, Cout:]
    else:
        scale = jnp.zeros((B, Cout), f32)
        shift = jnp.zeros((B, Cout), f32)
    g1 = params["g1"].astype(f32)[None, :]
    bta1 = params["beta1"].astype(f32)[None, :]
    ge1 = (g1 * (scale + 1.0))[:, :, None]                  # (B, Cout, 1)
    be1 = (bta1 * (scale + 1.0) + shift)[:, :, None]        # (B, Cout, 1)

    def conv_w(w_pt):   # (Cout, Cin, 3, 3) -> (9, Cout, Cin) tap-major layout
        co, ci = w_pt.shape[0], w_pt.shape[1]
        return jnp.transpose(w_pt, (2, 3, 0, 1)).reshape(9, co, ci).astype(matmul_dtype)

    col = lambda v: v.reshape(-1, 1).astype(f32)
    w1, w2 = conv_w(params["w1"]), conv_w(params["w2"])
    b1, b2 = col(params["b1"]), col(params["b2"])
    g2, bt2 = col(params["g2"]), col(params["beta2"])
    masks = _tap_masks(H, W, matmul_dtype)
    gmat = _group_avg_matrix(Cout, groups, HW)

    # ------------------------- VMEM budget / tiling ------------------------- #
    try:  # per-generation VMEM ceiling (v7x has only 64 MiB physical VMEM)
        vmem_cap = int(getattr(pltpu.get_tpu_info(), "vmem_capacity_bytes",
                               64 * 2 ** 20))
    except Exception:
        vmem_cap = 64 * 2 ** 20
    vmem_ceiling = int(min(100 * 2 ** 20, (vmem_cap * 7) // 8))  # ~56 MiB on v7x

    const_bytes = ((masks.size + w1.size + w2.size) * mm_bytes + gmat.size * 4
                   + (b1.size + b2.size + g2.size + bt2.size
                      + ge1.size + be1.size) * 4)
    if has_res:
        const_bytes += Cout * Cin * mm_bytes + Cout * 4
    # per image: double-buffered x/out blocks + in-kernel f32/bf16 temporaries
    per_image = HW * (2 * (Cin + Cout) * io_bytes
                      + (2 * Cin + 2 * Cout) * mm_bytes + 6 * Cout * 4)
    bt = _pick_bt(B, per_image,
                  max(vmem_ceiling - 2 * const_bytes, 2 ** 20) // 2)
    vmem_limit = int(min(vmem_ceiling,
                         max(16 * 2 ** 20, 2 * const_bytes + 2 * bt * per_image)))

    # -------------------------- operands and specs -------------------------- #
    ins = [x2, masks, w1, b1, ge1, be1, w2, b2, g2, bt2, gmat]
    in_specs = [pl.BlockSpec((bt, Cin, HW), lambda b: (b, 0, 0)),
                _const_spec(masks), _const_spec(w1), _const_spec(b1),
                _const_spec(ge1), _const_spec(be1),
                _const_spec(w2), _const_spec(b2), _const_spec(g2),
                _const_spec(bt2), _const_spec(gmat)]
    if has_res:
        rw = params["rw"].reshape(Cout, Cin).astype(matmul_dtype)
        rb = col(params["rb"])
        ins += [rw, rb]
        in_specs += [_const_spec(rw), _const_spec(rb)]

    flops = 2 * B * HW * (9 * Cout * Cin + 9 * Cout * Cout
                          + (Cout * Cin if has_res else 0))
    bytes_accessed = io_bytes * (int(x2.size) + B * Cout * HW) + sum(
        int(a.size) * a.dtype.itemsize for a in ins[1:])
    cost = pl.CostEstimate(flops=int(flops),
                           transcendentals=int(2 * B * Cout * HW),
                           bytes_accessed=int(bytes_accessed))

    kernel = partial(_resnet_block_kernel, H=H, W=W, bt=bt,
                     has_res_conv=has_res, matmul_dtype=matmul_dtype)

    out = pl.pallas_call(
        kernel,
        out_shape=jax.ShapeDtypeStruct((B, Cout, HW), io_dtype),
        grid=(B // bt,),
        in_specs=in_specs,
        out_specs=pl.BlockSpec((bt, Cout, HW), lambda b: (b, 0, 0)),
        compiler_params=pltpu.CompilerParams(
            dimension_semantics=("parallel",),
            vmem_limit_bytes=vmem_limit),
        cost_estimate=cost,
    )(*ins)
    return out.reshape(B, Cout, H, W)


# --------------------------- pure-XLA reference ------------------------------ #

def ref_resnet_block(x_nchw, params, time_emb=None, *, groups=8,
                     matmul_dtype=jnp.bfloat16):
    """XLA reference with the same precision policy as the kernel (matmul
    operands in matmul_dtype, f32 accumulation / GroupNorm / activations)."""
    f32 = jnp.float32
    x = x_nchw.astype(f32)
    Cout = params["w1"].shape[0]

    def conv(v, w, b):
        y = jax.lax.conv_general_dilated(
            v.astype(matmul_dtype), w.astype(matmul_dtype), (1, 1), "SAME",
            dimension_numbers=("NCHW", "OIHW", "NCHW"),
            preferred_element_type=f32)
        return y + b.astype(f32).reshape(1, -1, 1, 1)

    def gn(v, gamma, beta):
        B, C, H, W = v.shape
        vg = v.reshape(B, groups, C // groups, H, W)
        mean = vg.mean(axis=(2, 3, 4), keepdims=True)
        var = ((vg - mean) ** 2).mean(axis=(2, 3, 4), keepdims=True)
        vn = ((vg - mean) * jax.lax.rsqrt(var + EPS)).reshape(B, C, H, W)
        return (vn * gamma.astype(f32).reshape(1, -1, 1, 1)
                + beta.astype(f32).reshape(1, -1, 1, 1))

    if time_emb is not None:
        te = time_emb.astype(f32)
        te = te * jax.nn.sigmoid(te)
        te = te @ params["mlp_w"].astype(f32).T + params["mlp_b"].astype(f32)
        scale = te[:, :Cout, None, None]
        shift = te[:, Cout:, None, None]
    else:
        scale = shift = None

    h = gn(conv(x, params["w1"], params["b1"]), params["g1"], params["beta1"])
    if scale is not None:
        h = h * (scale + 1.0) + shift
    h = h * jax.nn.sigmoid(h)
    h = gn(conv(h, params["w2"], params["b2"]), params["g2"], params["beta2"])
    h = h * jax.nn.sigmoid(h)

    res = conv(x, params["rw"], params["rb"]) if "rw" in params else x
    return h + res


# ---------------------------------- params ----------------------------------- #

def make_params(key, dim, dim_out, time_emb_dim, groups):
    """PyTorch-layout parameters for ResnetBlock(dim, dim_out, time_emb_dim, groups)."""
    del groups
    ks = jax.random.split(key, 12)
    p = {
        "w1": 0.1 * jax.random.normal(ks[0], (dim_out, dim, 3, 3), jnp.float32),
        "b1": 0.1 * jax.random.normal(ks[1], (dim_out,), jnp.float32),
        "g1": 1.0 + 0.1 * jax.random.normal(ks[2], (dim_out,), jnp.float32),
        "beta1": 0.1 * jax.random.normal(ks[3], (dim_out,), jnp.float32),
        "w2": 0.1 * jax.random.normal(ks[4], (dim_out, dim_out, 3, 3), jnp.float32),
        "b2": 0.1 * jax.random.normal(ks[5], (dim_out,), jnp.float32),
        "g2": 1.0 + 0.1 * jax.random.normal(ks[6], (dim_out,), jnp.float32),
        "beta2": 0.1 * jax.random.normal(ks[7], (dim_out,), jnp.float32),
        "mlp_w": 0.1 * jax.random.normal(ks[8], (2 * dim_out, time_emb_dim), jnp.float32),
        "mlp_b": 0.1 * jax.random.normal(ks[9], (2 * dim_out,), jnp.float32),
    }
    if dim != dim_out:  # matches PyTorch: res_conv only when dim != dim_out
        p["rw"] = 0.1 * jax.random.normal(ks[10], (dim_out, dim, 1, 1), jnp.float32)
        p["rb"] = 0.1 * jax.random.normal(ks[11], (dim_out,), jnp.float32)
    return p


# ------------------------------------ main ------------------------------------ #

if __name__ == "__main__":
    _forward = jax.jit(resnet_block_forward, static_argnames=("groups", "matmul_dtype"))
    _reference = jax.jit(ref_resnet_block, static_argnames=("groups", "matmul_dtype"))

    key = jax.random.PRNGKey(0)
    kx, kt, kp, kp2, kx2 = jax.random.split(key, 5)

    B, H, W = 2, 16, 16
    time_emb_dim, groups = 32, 4

    # Case 1: dim != dim_out  ->  1x1 res_conv path.
    dim, dim_out = 4, 8
    x = jax.random.normal(kx, (B, dim, H, W), jnp.float32)
    t_emb = jax.random.normal(kt, (B, time_emb_dim), jnp.float32)
    params = make_params(kp, dim, dim_out, time_emb_dim, groups)

    # (a) f32 matmuls: tight algorithmic check (roll/mask taps, two-pass GN,
    #     scale/shift folding).
    out = jax.block_until_ready(_forward(x, params, t_emb, groups=groups,
                                         matmul_dtype=jnp.float32))
    ref = jax.block_until_ready(_reference(x, params, t_emb, groups=groups,
                                           matmul_dtype=jnp.float32))
    assert out.shape == (B, dim_out, H, W)
    np.testing.assert_allclose(np.asarray(out), np.asarray(ref), rtol=2e-3, atol=2e-3)

    # (b) bf16 MXU operands (f32 accumulate / GroupNorm) -- v6e/v7x fast path.
    out_bf = jax.block_until_ready(_forward(x, params, t_emb, groups=groups,
                                            matmul_dtype=jnp.bfloat16))
    ref_bf = jax.block_until_ready(_reference(x, params, t_emb, groups=groups,
                                              matmul_dtype=jnp.bfloat16))
    np.testing.assert_allclose(np.asarray(out_bf), np.asarray(ref_bf),
                               rtol=5e-3, atol=5e-3)

    # Case 2: dim == dim_out -> nn.Identity residual (how ContextNet uses it).
    dim2 = 8
    x2 = jax.random.normal(kx2, (B, dim2, H, W), jnp.float32)
    params2 = make_params(kp2, dim2, dim2, time_emb_dim, groups)
    out2 = jax.block_until_ready(_forward(x2, params2, t_emb, groups=groups,
                                          matmul_dtype=jnp.bfloat16))
    ref2 = jax.block_until_ready(_reference(x2, params2, t_emb, groups=groups,
                                            matmul_dtype=jnp.bfloat16))
    assert out2.shape == (B, dim2, H, W)
    np.testing.assert_allclose(np.asarray(out2), np.asarray(ref2),
                               rtol=5e-3, atol=5e-3)

    # Case 3: bf16 activations at the pallas_call boundary (v5e/v6e HBM-traffic
    # win for this memory-bound layer); sanity-check shape/dtype/finiteness.
    out_io = jax.block_until_ready(_forward(x2.astype(jnp.bfloat16), params2, t_emb,
                                            groups=groups, matmul_dtype=jnp.bfloat16))
    assert out_io.shape == (B, dim2, H, W) and out_io.dtype == jnp.bfloat16
    assert bool(jnp.all(jnp.isfinite(out_io.astype(jnp.float32))))

    print("KERNEL_OK")
</pallas_src>

<mosaic_0001>
module attributes {stable_mosaic.version = 11 : i64} {
  func.func @_resnet_block_kernel(%arg0: i32, %arg1: memref<2x4x256xf32, #tpu.memory_space<vmem>>, %arg2: memref<9x256xf32, #tpu.memory_space<vmem>>, %arg3: memref<9x8x4xf32, #tpu.memory_space<vmem>>, %arg4: memref<8x1xf32, #tpu.memory_space<vmem>>, %arg5: memref<2x8x1xf32, #tpu.memory_space<vmem>>, %arg6: memref<2x8x1xf32, #tpu.memory_space<vmem>>, %arg7: memref<9x8x8xf32, #tpu.memory_space<vmem>>, %arg8: memref<8x1xf32, #tpu.memory_space<vmem>>, %arg9: memref<8x1xf32, #tpu.memory_space<vmem>>, %arg10: memref<8x1xf32, #tpu.memory_space<vmem>>, %arg11: memref<8x8xf32, #tpu.memory_space<vmem>>, %arg12: memref<8x4xf32, #tpu.memory_space<vmem>>, %arg13: memref<8x1xf32, #tpu.memory_space<vmem>>, %arg14: memref<2x8x256xf32, #tpu.memory_space<vmem>>) attributes {dimension_semantics = [#tpu.dimension_semantics<parallel>], iteration_bounds = array<i64: 1>, scalar_prefetch = 0 : i64, scratch_operands = 0 : i64, tpu.core_type = #tpu.core_type<tc>, window_params = [{transform_indices = @transform_0, window_bounds = array<i64: 2, 4, 256>}, {pipeline_mode = #tpu.pipeline_mode<synchronous>, transform_indices = @transform_1, window_bounds = array<i64: 9, 256>}, {pipeline_mode = #tpu.pipeline_mode<synchronous>, transform_indices = @transform_2, window_bounds = array<i64: 9, 8, 4>}, {pipeline_mode = #tpu.pipeline_mode<synchronous>, transform_indices = @transform_3, window_bounds = array<i64: 8, 1>}, {pipeline_mode = #tpu.pipeline_mode<synchronous>, transform_indices = @transform_4, window_bounds = array<i64: 2, 8, 1>}, {pipeline_mode = #tpu.pipeline_mode<synchronous>, transform_indices = @transform_5, window_bounds = array<i64: 2, 8, 1>}, {pipeline_mode = #tpu.pipeline_mode<synchronous>, transform_indices = @transform_6, window_bounds = array<i64: 9, 8, 8>}, {pipeline_mode = #tpu.pipeline_mode<synchronous>, transform_indices = @transform_7, window_bounds = array<i64: 8, 1>}, {pipeline_mode = #tpu.pipeline_mode<synchronous>, transform_indices = @transform_8, window_bounds = array<i64: 8, 1>}, {pipeline_mode = #tpu.pipeline_mode<synchronous>, transform_indices = @transform_9, window_bounds = array<i64: 8, 1>}, {pipeline_mode = #tpu.pipeline_mode<synchronous>, transform_indices = @transform_10, window_bounds = array<i64: 8, 8>}, {pipeline_mode = #tpu.pipeline_mode<synchronous>, transform_indices = @transform_11, window_bounds = array<i64: 8, 4>}, {pipeline_mode = #tpu.pipeline_mode<synchronous>, transform_indices = @transform_12, window_bounds = array<i64: 8, 1>}, {transform_indices = @transform_13, window_bounds = array<i64: 2, 8, 256>}]} {
    %c0 = arith.constant 0 : index
    %c0_0 = arith.constant 0 : index
    %0 = vector.load %arg2[%c0, %c0_0] : memref<9x256xf32, #tpu.memory_space<vmem>>, vector<9x256xf32>
    %c0_1 = arith.constant 0 : index
    %c0_2 = arith.constant 0 : index
    %1 = vector.load %arg11[%c0_1, %c0_2] : memref<8x8xf32, #tpu.memory_space<vmem>>, vector<8x8xf32>
    %c0_3 = arith.constant 0 : index
    %c0_4 = arith.constant 0 : index
    %2 = vector.load %arg4[%c0_3, %c0_4] : memref<8x1xf32, #tpu.memory_space<vmem>>, vector<8x1xf32>
    %c0_5 = arith.constant 0 : index
    %c0_6 = arith.constant 0 : index
    %3 = vector.load %arg8[%c0_5, %c0_6] : memref<8x1xf32, #tpu.memory_space<vmem>>, vector<8x1xf32>
    %c0_7 = arith.constant 0 : index
    %c0_8 = arith.constant 0 : index
    %4 = vector.load %arg9[%c0_7, %c0_8] : memref<8x1xf32, #tpu.memory_space<vmem>>, vector<8x1xf32>
    %c0_9 = arith.constant 0 : index
    %c0_10 = arith.constant 0 : index
    %5 = vector.load %arg10[%c0_9, %c0_10] : memref<8x1xf32, #tpu.memory_space<vmem>>, vector<8x1xf32>
    %c0_11 = arith.constant 0 : index
    %c0_12 = arith.constant 0 : index
    %c0_13 = arith.constant 0 : index
    %6 = vector.load %arg3[%c0_11, %c0_12, %c0_13] : memref<9x8x4xf32, #tpu.memory_space<vmem>>, vector<1x8x4xf32>
    %7 = vector.shape_cast %6 : vector<1x8x4xf32> to vector<8x4xf32>
    %c1 = arith.constant 1 : index
    %c0_14 = arith.constant 0 : index
    %c0_15 = arith.constant 0 : index
    %8 = vector.load %arg3[%c1, %c0_14, %c0_15] : memref<9x8x4xf32, #tpu.memory_space<vmem>>, vector<1x8x4xf32>
    %9 = vector.shape_cast %8 : vector<1x8x4xf32> to vector<8x4xf32>
    %c2 = arith.constant 2 : index
    %c0_16 = arith.constant 0 : index
    %c0_17 = arith.constant 0 : index
    %10 = vector.load %arg3[%c2, %c0_16, %c0_17] : memref<9x8x4xf32, #tpu.memory_space<vmem>>, vector<1x8x4xf32>
    %11 = vector.shape_cast %10 : vector<1x8x4xf32> to vector<8x4xf32>
    %c3 = arith.constant 3 : index
    %c0_18 = arith.constant 0 : index
    %c0_19 = arith.constant 0 : index
    %12 = vector.load %arg3[%c3, %c0_18, %c0_19] : memref<9x8x4xf32, #tpu.memory_space<vmem>>, vector<1x8x4xf32>
    %13 = vector.shape_cast %12 : vector<1x8x4xf32> to vector<8x4xf32>
    %c4 = arith.constant 4 : index
    %c0_20 = arith.constant 0 : index
    %c0_21 = arith.constant 0 : index
    %14 = vector.load %arg3[%c4, %c0_20, %c0_21] : memref<9x8x4xf32, #tpu.memory_space<vmem>>, vector<1x8x4xf32>
    %15 = vector.shape_cast %14 : vector<1x8x4xf32> to vector<8x4xf32>
    %c5 = arith.constant 5 : index
    %c0_22 = arith.constant 0 : index
    %c0_23 = arith.constant 0 : index
    %16 = vector.load %arg3[%c5, %c0_22, %c0_23] : memref<9x8x4xf32, #tpu.memory_space<vmem>>, vector<1x8x4xf32>
    %17 = vector.shape_cast %16 : vector<1x8x4xf32> to vector<8x4xf32>
    %c6 = arith.constant 6 : index
    %c0_24 = arith.constant 0 : index
    %c0_25 = arith.constant 0 : index
    %18 = vector.load %arg3[%c6, %c0_24, %c0_25] : memref<9x8x4xf32, #tpu.memory_space<vmem>>, vector<1x8x4xf32>
    %19 = vector.shape_cast %18 : vector<1x8x4xf32> to vector<8x4xf32>
    %c7 = arith.constant 7 : index
    %c0_26 = arith.constant 0 : index
    %c0_27 = arith.constant 0 : index
    %20 = vector.load %arg3[%c7, %c0_26, %c0_27] : memref<9x8x4xf32, #tpu.memory_space<vmem>>, vector<1x8x4xf32>
    %21 = vector.shape_cast %20 : vector<1x8x4xf32> to vector<8x4xf32>
    %c8 = arith.constant 8 : index
    %c0_28 = arith.constant 0 : index
    %c0_29 = arith.constant 0 : index
    %22 = vector.load %arg3[%c8, %c0_28, %c0_29] : memref<9x8x4xf32, #tpu.memory_space<vmem>>, vector<1x8x4xf32>
    %23 = vector.shape_cast %22 : vector<1x8x4xf32> to vector<8x4xf32>
    %c0_30 = arith.constant 0 : index
    %c0_31 = arith.constant 0 : index
    %c0_32 = arith.constant 0 : index
    %24 = vector.load %arg7[%c0_30, %c0_31, %c0_32] : memref<9x8x8xf32, #tpu.memory_space<vmem>>, vector<1x8x8xf32>
    %25 = vector.shape_cast %24 : vector<1x8x8xf32> to vector<8x8xf32>
    %c1_33 = arith.constant 1 : index
    %c0_34 = arith.constant 0 : index
    %c0_35 = arith.constant 0 : index
    %26 = vector.load %arg7[%c1_33, %c0_34, %c0_35] : memref<9x8x8xf32, #tpu.memory_space<vmem>>, vector<1x8x8xf32>
    %27 = vector.shape_cast %26 : vector<1x8x8xf32> to vector<8x8xf32>
    %c2_36 = arith.constant 2 : index
    %c0_37 = arith.constant 0 : index
    %c0_38 = arith.constant 0 : index
    %28 = vector.load %arg7[%c2_36, %c0_37, %c0_38] : memref<9x8x8xf32, #tpu.memory_space<vmem>>, vector<1x8x8xf32>
    %29 = vector.shape_cast %28 : vector<1x8x8xf32> to vector<8x8xf32>
    %c3_39 = arith.constant 3 : index
    %c0_40 = arith.constant 0 : index
    %c0_41 = arith.constant 0 : index
    %30 = vector.load %arg7[%c3_39, %c0_40, %c0_41] : memref<9x8x8xf32, #tpu.memory_space<vmem>>, vector<1x8x8xf32>
    %31 = vector.shape_cast %30 : vector<1x8x8xf32> to vector<8x8xf32>
    %c4_42 = arith.constant 4 : index
    %c0_43 = arith.constant 0 : index
    %c0_44 = arith.constant 0 : index
    %32 = vector.load %arg7[%c4_42, %c0_43, %c0_44] : memref<9x8x8xf32, #tpu.memory_space<vmem>>, vector<1x8x8xf32>
    %33 = vector.shape_cast %32 : vector<1x8x8xf32> to vector<8x8xf32>
    %c5_45 = arith.constant 5 : index
    %c0_46 = arith.constant 0 : index
    %c0_47 = arith.constant 0 : index
    %34 = vector.load %arg7[%c5_45, %c0_46, %c0_47] : memref<9x8x8xf32, #tpu.memory_space<vmem>>, vector<1x8x8xf32>
    %35 = vector.shape_cast %34 : vector<1x8x8xf32> to vector<8x8xf32>
    %c6_48 = arith.constant 6 : index
    %c0_49 = arith.constant 0 : index
    %c0_50 = arith.constant 0 : index
    %36 = vector.load %arg7[%c6_48, %c0_49, %c0_50] : memref<9x8x8xf32, #tpu.memory_space<vmem>>, vector<1x8x8xf32>
    %37 = vector.shape_cast %36 : vector<1x8x8xf32> to vector<8x8xf32>
    %c7_51 = arith.constant 7 : index
    %c0_52 = arith.constant 0 : index
    %c0_53 = arith.constant 0 : index
    %38 = vector.load %arg7[%c7_51, %c0_52, %c0_53] : memref<9x8x8xf32, #tpu.memory_space<vmem>>, vector<1x8x8xf32>
    %39 = vector.shape_cast %38 : vector<1x8x8xf32> to vector<8x8xf32>
    %c8_54 = arith.constant 8 : index
    %c0_55 = arith.constant 0 : index
    %c0_56 = arith.constant 0 : index
    %40 = vector.load %arg7[%c8_54, %c0_55, %c0_56] : memref<9x8x8xf32, #tpu.memory_space<vmem>>, vector<1x8x8xf32>
    %41 = vector.shape_cast %40 : vector<1x8x8xf32> to vector<8x8xf32>
    %c0_57 = arith.constant 0 : index
    %c0_58 = arith.constant 0 : index
    %42 = vector.load %arg12[%c0_57, %c0_58] : memref<8x4xf32, #tpu.memory_space<vmem>>, vector<8x4xf32>
    %c0_59 = arith.constant 0 : index
    %c0_60 = arith.constant 0 : index
    %43 = vector.load %arg13[%c0_59, %c0_60] : memref<8x1xf32, #tpu.memory_space<vmem>>, vector<8x1xf32>
    %c2_i32 = arith.constant 2 : i32
    %44 = arith.muli %arg0, %c2_i32 : i32
    %c0_61 = arith.constant 0 : index
    %c0_62 = arith.constant 0 : index
    %c0_63 = arith.constant 0 : index
    %45 = vector.load %arg1[%c0_61, %c0_62, %c0_63] : memref<2x4x256xf32, #tpu.memory_space<vmem>>, vector<1x4x256xf32>
    %46 = vector.shape_cast %45 : vector<1x4x256xf32> to vector<4x256xf32>
    %c17_i32 = arith.constant 17 : i32
    %47 = tpu.dynamic_rotate %46 by %c17_i32 dim 1 : vector<4x256xf32>, i32 -> vector<4x256xf32>
    %48 = vector.extract_strided_slice %0 {offsets = [0, 0], sizes = [1, 256], strides = [1, 1]} : vector<9x256xf32> to vector<1x256xf32>
    %49 = vector.broadcast %48 : vector<1x256xf32> to vector<4x256xf32>
    %50 = arith.mulf %47, %49 : vector<4x256xf32>
    %cst = arith.constant dense<0.000000e+00> : vector<8x256xf32>
    %51 = tpu.matmul %7, %50, %cst {dimension_numbers = #tpu.dot_dimension_numbers<[1], [0], [0], [1], [0, 0, 1, 1], [], []>} : vector<8x4xf32>, vector<4x256xf32>, vector<8x256xf32> -> vector<8x256xf32>
    %c16_i32 = arith.constant 16 : i32
    %52 = tpu.dynamic_rotate %46 by %c16_i32 dim 1 : vector<4x256xf32>, i32 -> vector<4x256xf32>
    %53 = vector.extract_strided_slice %0 {offsets = [1, 0], sizes = [1, 256], strides = [1, 1]} : vector<9x256xf32> to vector<1x256xf32>
    %54 = vector.broadcast %53 : vector<1x256xf32> to vector<4x256xf32>
    %55 = arith.mulf %52, %54 : vector<4x256xf32>
    %cst_64 = arith.constant dense<0.000000e+00> : vector<8x256xf32>
    %56 = tpu.matmul %9, %55, %cst_64 {dimension_numbers = #tpu.dot_dimension_numbers<[1], [0], [0], [1], [0, 0, 1, 1], [], []>} : vector<8x4xf32>, vector<4x256xf32>, vector<8x256xf32> -> vector<8x256xf32>
    %57 = arith.addf %51, %56 : vector<8x256xf32>
    %c15_i32 = arith.constant 15 : i32
    %58 = tpu.dynamic_rotate %46 by %c15_i32 dim 1 : vector<4x256xf32>, i32 -> vector<4x256xf32>
    %59 = vector.extract_strided_slice %0 {offsets = [2, 0], sizes = [1, 256], strides = [1, 1]} : vector<9x256xf32> to vector<1x256xf32>
    %60 = vector.broadcast %59 : vector<1x256xf32> to vector<4x256xf32>
    %61 = arith.mulf %58, %60 : vector<4x256xf32>
    %cst_65 = arith.constant dense<0.000000e+00> : vector<8x256xf32>
    %62 = tpu.matmul %11, %61, %cst_65 {dimension_numbers = #tpu.dot_dimension_numbers<[1], [0], [0], [1], [0, 0, 1, 1], [], []>} : vector<8x4xf32>, vector<4x256xf32>, vector<8x256xf32> -> vector<8x256xf32>
    %63 = arith.addf %57, %62 : vector<8x256xf32>
    %c1_i32 = arith.constant 1 : i32
    %64 = tpu.dynamic_rotate %46 by %c1_i32 dim 1 : vector<4x256xf32>, i32 -> vector<4x256xf32>
    %65 = vector.extract_strided_slice %0 {offsets = [3, 0], sizes = [1, 256], strides = [1, 1]} : vector<9x256xf32> to vector<1x256xf32>
    %66 = vector.broadcast %65 : vector<1x256xf32> to vector<4x256xf32>
    %67 = arith.mulf %64, %66 : vector<4x256xf32>
    %cst_66 = arith.constant dense<0.000000e+00> : vector<8x256xf32>
    %68 = tpu.matmul %13, %67, %cst_66 {dimension_numbers = #tpu.dot_dimension_numbers<[1], [0], [0], [1], [0, 0, 1, 1], [], []>} : vector<8x4xf32>, vector<4x256xf32>, vector<8x256xf32> -> vector<8x256xf32>
    %69 = arith.addf %63, %68 : vector<8x256xf32>
    %cst_67 = arith.constant dense<0.000000e+00> : vector<8x256xf32>
    %70 = tpu.matmul %15, %46, %cst_67 {dimension_numbers = #tpu.dot_dimension_numbers<[1], [0], [0], [1], [0, 0, 1, 1], [], []>} : vector<8x4xf32>, vector<4x256xf32>, vector<8x256xf32> -> vector<8x256xf32>
    %71 = arith.addf %69, %70 : vector<8x256xf32>
    %c255_i32 = arith.constant 255 : i32
    %72 = tpu.dynamic_rotate %46 by %c255_i32 dim 1 : vector<4x256xf32>, i32 -> vector<4x256xf32>
    %73 = vector.extract_strided_slice %0 {offsets = [5, 0], sizes = [1, 256], strides = [1, 1]} : vector<9x256xf32> to vector<1x256xf32>
    %74 = vector.broadcast %73 : vector<1x256xf32> to vector<4x256xf32>
    %75 = arith.mulf %72, %74 : vector<4x256xf32>
    %cst_68 = arith.constant dense<0.000000e+00> : vector<8x256xf32>
    %76 = tpu.matmul %17, %75, %cst_68 {dimension_numbers = #tpu.dot_dimension_numbers<[1], [0], [0], [1], [0, 0, 1, 1], [], []>} : vector<8x4xf32>, vector<4x256xf32>, vector<8x256xf32> -> vector<8x256xf32>
    %77 = arith.addf %71, %76 : vector<8x256xf32>
    %c241_i32 = arith.constant 241 : i32
    %78 = tpu.dynamic_rotate %46 by %c241_i32 dim 1 : vector<4x256xf32>, i32 -> vector<4x256xf32>
    %79 = vector.extract_strided_slice %0 {offsets = [6, 0], sizes = [1, 256], strides = [1, 1]} : vector<9x256xf32> to vector<1x256xf32>
    %80 = vector.broadcast %79 : vector<1x256xf32> to vector<4x256xf32>
    %81 = arith.mulf %78, %80 : vector<4x256xf32>
    %cst_69 = arith.constant dense<0.000000e+00> : vector<8x256xf32>
    %82 = tpu.matmul %19, %81, %cst_69 {dimension_numbers = #tpu.dot_dimension_numbers<[1], [0], [0], [1], [0, 0, 1, 1], [], []>} : vector<8x4xf32>, vector<4x256xf32>, vector<8x256xf32> -> vector<8x256xf32>
    %83 = arith.addf %77, %82 : vector<8x256xf32>
    %c240_i32 = arith.constant 240 : i32
    %84 = tpu.dynamic_rotate %46 by %c240_i32 dim 1 : vector<4x256xf32>, i32 -> vector<4x256xf32>
    %85 = vector.extract_strided_slice %0 {offsets = [7, 0], sizes = [1, 256], strides = [1, 1]} : vector<9x256xf32> to vector<1x256xf32>
    %86 = vector.broadcast %85 : vector<1x256xf32> to vector<4x256xf32>
    %87 = arith.mulf %84, %86 : vector<4x256xf32>
    %cst_70 = arith.constant dense<0.000000e+00> : vector<8x256xf32>
    %88 = tpu.matmul %21, %87, %cst_70 {dimension_numbers = #tpu.dot_dimension_numbers<[1], [0], [0], [1], [0, 0, 1, 1], [], []>} : vector<8x4xf32>, vector<4x256xf32>, vector<8x256xf32> -> vector<8x256xf32>
    %89 = arith.addf %83, %88 : vector<8x256xf32>
    %c239_i32 = arith.constant 239 : i32
    %90 = tpu.dynamic_rotate %46 by %c239_i32 dim 1 : vector<4x256xf32>, i32 -> vector<4x256xf32>
    %91 = vector.extract_strided_slice %0 {offsets = [8, 0], sizes = [1, 256], strides = [1, 1]} : vector<9x256xf32> to vector<1x256xf32>
    %92 = vector.broadcast %91 : vector<1x256xf32> to vector<4x256xf32>
    %93 = arith.mulf %90, %92 : vector<4x256xf32>
    %cst_71 = arith.constant dense<0.000000e+00> : vector<8x256xf32>
    %94 = tpu.matmul %23, %93, %cst_71 {dimension_numbers = #tpu.dot_dimension_numbers<[1], [0], [0], [1], [0, 0, 1, 1], [], []>} : vector<8x4xf32>, vector<4x256xf32>, vector<8x256xf32> -> vector<8x256xf32>
    %95 = arith.addf %89, %94 : vector<8x256xf32>
    %96 = vector.broadcast %2 : vector<8x1xf32> to vector<8x256xf32>
    %97 = arith.addf %95, %96 : vector<8x256xf32>
    %c0_i32 = arith.constant 0 : i32
    %98 = arith.addi %44, %c0_i32 : i32
    %99 = arith.index_cast %98 : i32 to index
    %c0_72 = arith.constant 0 : index
    %c0_73 = arith.constant 0 : index
    %100 = vector.load %arg5[%99, %c0_72, %c0_73] : memref<2x8x1xf32, #tpu.memory_space<vmem>>, vector<1x8x1xf32>
    %101 = vector.shape_cast %100 : vector<1x8x1xf32> to vector<8x1xf32>
    %c0_i32_74 = arith.constant 0 : i32
    %102 = arith.addi %44, %c0_i32_74 : i32
    %103 = arith.index_cast %102 : i32 to index
    %c0_75 = arith.constant 0 : index
    %c0_76 = arith.constant 0 : index
    %104 = vector.load %arg6[%103, %c0_75, %c0_76] : memref<2x8x1xf32, #tpu.memory_space<vmem>>, vector<1x8x1xf32>
    %105 = vector.shape_cast %104 : vector<1x8x1xf32> to vector<8x1xf32>
    %cst_77 = arith.constant dense<0.000000e+00> : vector<8xf32>
    %106 = vector.multi_reduction <add>, %97, %cst_77 [1] : vector<8x256xf32> to vector<8xf32>
    %107 = vector.shape_cast %106 : vector<8xf32> to vector<8x1xf32>
    %cst_78 = arith.constant dense<0.000000e+00> : vector<8x1xf32>
    %108 = tpu.matmul %1, %107, %cst_78 {dimension_numbers = #tpu.dot_dimension_numbers<[1], [0], [0], [1], [0, 0, 1, 1], [], []>} : vector<8x8xf32>, vector<8x1xf32>, vector<8x1xf32> -> vector<8x1xf32>
    %109 = vector.broadcast %108 : vector<8x1xf32> to vector<8x256xf32>
    %110 = arith.subf %97, %109 : vector<8x256xf32>
    %111 = arith.mulf %110, %110 : vector<8x256xf32>
    %cst_79 = arith.constant dense<0.000000e+00> : vector<8xf32>
    %112 = vector.multi_reduction <add>, %111, %cst_79 [1] : vector<8x256xf32> to vector<8xf32>
    %113 = vector.shape_cast %112 : vector<8xf32> to vector<8x1xf32>
    %cst_80 = arith.constant dense<0.000000e+00> : vector<8x1xf32>
    %114 = tpu.matmul %1, %113, %cst_80 {dimension_numbers = #tpu.dot_dimension_numbers<[1], [0], [0], [1], [0, 0, 1, 1], [], []>} : vector<8x8xf32>, vector<8x1xf32>, vector<8x1xf32> -> vector<8x1xf32>
    %cst_81 = arith.constant 9.99999974E-6 : f32
    %115 = vector.broadcast %cst_81 : f32 to vector<8x1xf32>
    %116 = arith.addf %114, %115 : vector<8x1xf32>
    %117 = math.rsqrt %116 : vector<8x1xf32>
    %118 = vector.broadcast %117 : vector<8x1xf32> to vector<8x256xf32>
    %119 = arith.mulf %110, %118 : vector<8x256xf32>
    %120 = vector.broadcast %101 : vector<8x1xf32> to vector<8x256xf32>
    %121 = arith.mulf %119, %120 : vector<8x256xf32>
    %122 = vector.broadcast %105 : vector<8x1xf32> to vector<8x256xf32>
    %123 = arith.addf %121, %122 : vector<8x256xf32>
    %124 = arith.negf %123 : vector<8x256xf32>
    %125 = math.exp %124 : vector<8x256xf32>
    %cst_82 = arith.constant 1.000000e+00 : f32
    %126 = vector.broadcast %cst_82 : f32 to vector<8x256xf32>
    %127 = arith.addf %126, %125 : vector<8x256xf32>
    %128 = arith.divf %126, %127 : vector<8x256xf32>
    %129 = arith.mulf %123, %128 : vector<8x256xf32>
    %c17_i32_83 = arith.constant 17 : i32
    %130 = tpu.dynamic_rotate %129 by %c17_i32_83 dim 1 : vector<8x256xf32>, i32 -> vector<8x256xf32>
    %131 = vector.extract_strided_slice %0 {offsets = [0, 0], sizes = [1, 256], strides = [1, 1]} : vector<9x256xf32> to vector<1x256xf32>
    %132 = vector.broadcast %131 : vector<1x256xf32> to vector<8x256xf32>
    %133 = arith.mulf %130, %132 : vector<8x256xf32>
    %cst_84 = arith.constant dense<0.000000e+00> : vector<8x256xf32>
    %134 = tpu.matmul %25, %133, %cst_84 {dimension_numbers = #tpu.dot_dimension_numbers<[1], [0], [0], [1], [0, 0, 1, 1], [], []>} : vector<8x8xf32>, vector<8x256xf32>, vector<8x256xf32> -> vector<8x256xf32>
    %c16_i32_85 = arith.constant 16 : i32
    %135 = tpu.dynamic_rotate %129 by %c16_i32_85 dim 1 : vector<8x256xf32>, i32 -> vector<8x256xf32>
    %136 = vector.extract_strided_slice %0 {offsets = [1, 0], sizes = [1, 256], strides = [1, 1]} : vector<9x256xf32> to vector<1x256xf32>
    %137 = vector.broadcast %136 : vector<1x256xf32> to vector<8x256xf32>
    %138 = arith.mulf %135, %137 : vector<8x256xf32>
    %cst_86 = arith.constant dense<0.000000e+00> : vector<8x256xf32>
    %139 = tpu.matmul %27, %138, %cst_86 {dimension_numbers = #tpu.dot_dimension_numbers<[1], [0], [0], [1], [0, 0, 1, 1], [], []>} : vector<8x8xf32>, vector<8x256xf32>, vector<8x256xf32> -> vector<8x256xf32>
    %140 = arith.addf %134, %139 : vector<8x256xf32>
    %c15_i32_87 = arith.constant 15 : i32
    %141 = tpu.dynamic_rotate %129 by %c15_i32_87 dim 1 : vector<8x256xf32>, i32 -> vector<8x256xf32>
    %142 = vector.extract_strided_slice %0 {offsets = [2, 0], sizes = [1, 256], strides = [1, 1]} : vector<9x256xf32> to vector<1x256xf32>
    %143 = vector.broadcast %142 : vector<1x256xf32> to vector<8x256xf32>
    %144 = arith.mulf %141, %143 : vector<8x256xf32>
    %cst_88 = arith.constant dense<0.000000e+00> : vector<8x256xf32>
    %145 = tpu.matmul %29, %144, %cst_88 {dimension_numbers = #tpu.dot_dimension_numbers<[1], [0], [0], [1], [0, 0, 1, 1], [], []>} : vector<8x8xf32>, vector<8x256xf32>, vector<8x256xf32> -> vector<8x256xf32>
    %146 = arith.addf %140, %145 : vector<8x256xf32>
    %c1_i32_89 = arith.constant 1 : i32
    %147 = tpu.dynamic_rotate %129 by %c1_i32_89 dim 1 : vector<8x256xf32>, i32 -> vector<8x256xf32>
    %148 = vector.extract_strided_slice %0 {offsets = [3, 0], sizes = [1, 256], strides = [1, 1]} : vector<9x256xf32> to vector<1x256xf32>
    %149 = vector.broadcast %148 : vector<1x256xf32> to vector<8x256xf32>
    %150 = arith.mulf %147, %149 : vector<8x256xf32>
    %cst_90 = arith.constant dense<0.000000e+00> : vector<8x256xf32>
    %151 = tpu.matmul %31, %150, %cst_90 {dimension_numbers = #tpu.dot_dimension_numbers<[1], [0], [0], [1], [0, 0, 1, 1], [], []>} : vector<8x8xf32>, vector<8x256xf32>, vector<8x256xf32> -> vector<8x256xf32>
    %152 = arith.addf %146, %151 : vector<8x256xf32>
    %cst_91 = arith.constant dense<0.000000e+00> : vector<8x256xf32>
    %153 = tpu.matmul %33, %129, %cst_91 {dimension_numbers = #tpu.dot_dimension_numbers<[1], [0], [0], [1], [0, 0, 1, 1], [], []>} : vector<8x8xf32>, vector<8x256xf32>, vector<8x256xf32> -> vector<8x256xf32>
    %154 = arith.addf %152, %153 : vector<8x256xf32>
    %c255_i32_92 = arith.constant 255 : i32
    %155 = tpu.dynamic_rotate %129 by %c255_i32_92 dim 1 : vector<8x256xf32>, i32 -> vector<8x256xf32>
    %156 = vector.extract_strided_slice %0 {offsets = [5, 0], sizes = [1, 256], strides = [1, 1]} : vector<9x256xf32> to vector<1x256xf32>
    %157 = vector.broadcast %156 : vector<1x256xf32> to vector<8x256xf32>
    %158 = arith.mulf %155, %157 : vector<8x256xf32>
    %cst_93 = arith.constant dense<0.000000e+00> : vector<8x256xf32>
    %159 = tpu.matmul %35, %158, %cst_93 {dimension_numbers = #tpu.dot_dimension_numbers<[1], [0], [0], [1], [0, 0, 1, 1], [], []>} : vector<8x8xf32>, vector<8x256xf32>, vector<8x256xf32> -> vector<8x256xf32>
    %160 = arith.addf %154, %159 : vector<8x256xf32>
    %c241_i32_94 = arith.constant 241 : i32
    %161 = tpu.dynamic_rotate %129 by %c241_i32_94 dim 1 : vector<8x256xf32>, i32 -> vector<8x256xf32>
    %162 = vector.extract_strided_slice %0 {offsets = [6, 0], sizes = [1, 256], strides = [1, 1]} : vector<9x256xf32> to vector<1x256xf32>
    %163 = vector.broadcast %162 : vector<1x256xf32> to vector<8x256xf32>
    %164 = arith.mulf %161, %163 : vector<8x256xf32>
    %cst_95 = arith.constant dense<0.000000e+00> : vector<8x256xf32>
    %165 = tpu.matmul %37, %164, %cst_95 {dimension_numbers = #tpu.dot_dimension_numbers<[1], [0], [0], [1], [0, 0, 1, 1], [], []>} : vector<8x8xf32>, vector<8x256xf32>, vector<8x256xf32> -> vector<8x256xf32>
    %166 = arith.addf %160, %165 : vector<8x256xf32>
    %c240_i32_96 = arith.constant 240 : i32
    %167 = tpu.dynamic_rotate %129 by %c240_i32_96 dim 1 : vector<8x256xf32>, i32 -> vector<8x256xf32>
    %168 = vector.extract_strided_slice %0 {offsets = [7, 0], sizes = [1, 256], strides = [1, 1]} : vector<9x256xf32> to vector<1x256xf32>
    %169 = vector.broadcast %168 : vector<1x256xf32> to vector<8x256xf32>
    %170 = arith.mulf %167, %169 : vector<8x256xf32>
    %cst_97 = arith.constant dense<0.000000e+00> : vector<8x256xf32>
    %171 = tpu.matmul %39, %170, %cst_97 {dimension_numbers = #tpu.dot_dimension_numbers<[1], [0], [0], [1], [0, 0, 1, 1], [], []>} : vector<8x8xf32>, vector<8x256xf32>, vector<8x256xf32> -> vector<8x256xf32>
    %172 = arith.addf %166, %171 : vector<8x256xf32>
    %c239_i32_98 = arith.constant 239 : i32
    %173 = tpu.dynamic_rotate %129 by %c239_i32_98 dim 1 : vector<8x256xf32>, i32 -> vector<8x256xf32>
    %174 = vector.extract_strided_slice %0 {offsets = [8, 0], sizes = [1, 256], strides = [1, 1]} : vector<9x256xf32> to vector<1x256xf32>
    %175 = vector.broadcast %174 : vector<1x256xf32> to vector<8x256xf32>
    %176 = arith.mulf %173, %175 : vector<8x256xf32>
    %cst_99 = arith.constant dense<0.000000e+00> : vector<8x256xf32>
    %177 = tpu.matmul %41, %176, %cst_99 {dimension_numbers = #tpu.dot_dimension_numbers<[1], [0], [0], [1], [0, 0, 1, 1], [], []>} : vector<8x8xf32>, vector<8x256xf32>, vector<8x256xf32> -> vector<8x256xf32>
    %178 = arith.addf %172, %177 : vector<8x256xf32>
    %179 = vector.broadcast %3 : vector<8x1xf32> to vector<8x256xf32>
    %180 = arith.addf %178, %179 : vector<8x256xf32>
    %cst_100 = arith.constant dense<0.000000e+00> : vector<8xf32>
    %181 = vector.multi_reduction <add>, %180, %cst_100 [1] : vector<8x256xf32> to vector<8xf32>
    %182 = vector.shape_cast %181 : vector<8xf32> to vector<8x1xf32>
    %cst_101 = arith.constant dense<0.000000e+00> : vector<8x1xf32>
    %183 = tpu.matmul %1, %182, %cst_101 {dimension_numbers = #tpu.dot_dimension_numbers<[1], [0], [0], [1], [0, 0, 1, 1], [], []>} : vector<8x8xf32>, vector<8x1xf32>, vector<8x1xf32> -> vector<8x1xf32>
    %184 = vector.broadcast %183 : vector<8x1xf32> to vector<8x256xf32>
    %185 = arith.subf %180, %184 : vector<8x256xf32>
    %186 = arith.mulf %185, %185 : vector<8x256xf32>
    %cst_102 = arith.constant dense<0.000000e+00> : vector<8xf32>
    %187 = vector.multi_reduction <add>, %186, %cst_102 [1] : vector<8x256xf32> to vector<8xf32>
    %188 = vector.shape_cast %187 : vector<8xf32> to vector<8x1xf32>
    %cst_103 = arith.constant dense<0.000000e+00> : vector<8x1xf32>
    %189 = tpu.matmul %1, %188, %cst_103 {dimension_numbers = #tpu.dot_dimension_numbers<[1], [0], [0], [1], [0, 0, 1, 1], [], []>} : vector<8x8xf32>, vector<8x1xf32>, vector<8x1xf32> -> vector<8x1xf32>
    %cst_104 = arith.constant 9.99999974E-6 : f32
    %190 = vector.broadcast %cst_104 : f32 to vector<8x1xf32>
    %191 = arith.addf %189, %190 : vector<8x1xf32>
    %192 = math.rsqrt %191 : vector<8x1xf32>
    %193 = vector.broadcast %192 : vector<8x1xf32> to vector<8x256xf32>
    %194 = arith.mulf %185, %193 : vector<8x256xf32>
    %195 = vector.broadcast %4 : vector<8x1xf32> to vector<8x256xf32>
    %196 = arith.mulf %194, %195 : vector<8x256xf32>
    %197 = vector.broadcast %5 : vector<8x1xf32> to vector<8x256xf32>
    %198 = arith.addf %196, %197 : vector<8x256xf32>
    %199 = arith.negf %198 : vector<8x256xf32>
    %200 = math.exp %199 : vector<8x256xf32>
    %cst_105 = arith.constant 1.000000e+00 : f32
    %201 = vector.broadcast %cst_105 : f32 to vector<8x256xf32>
    %202 = arith.addf %201, %200 : vector<8x256xf32>
    %203 = arith.divf %201, %202 : vector<8x256xf32>
    %204 = arith.mulf %198, %203 : vector<8x256xf32>
    %cst_106 = arith.constant dense<0.000000e+00> : vector<8x256xf32>
    %205 = tpu.matmul %42, %46, %cst_106 {dimension_numbers = #tpu.dot_dimension_numbers<[1], [0], [0], [1], [0, 0, 1, 1], [], []>} : vector<8x4xf32>, vector<4x256xf32>, vector<8x256xf32> -> vector<8x256xf32>
    %206 = vector.broadcast %43 : vector<8x1xf32> to vector<8x256xf32>
    %207 = arith.addf %205, %206 : vector<8x256xf32>
    %208 = arith.addf %204, %207 : vector<8x256xf32>
    %c0_107 = arith.constant 0 : index
    %c0_108 = arith.constant 0 : index
    %c0_109 = arith.constant 0 : index
    %209 = vector.load %arg14[%c0_107, %c0_108, %c0_109] : memref<2x8x256xf32, #tpu.memory_space<vmem>>, vector<1x8x256xf32>
    %210 = vector.shape_cast %209 : vector<1x8x256xf32> to vector<8x256xf32>
    %211 = vector.shape_cast %208 : vector<8x256xf32> to vector<1x8x256xf32>
    tpu.vector_store %arg14[%c0_107, %c0_108, %c0_109], %211 {strides = array<i32>} : memref<2x8x256xf32, #tpu.memory_space<vmem>>, vector<1x8x256xf32>,
    %c1_110 = arith.constant 1 : index
    %c0_111 = arith.constant 0 : index
    %c0_112 = arith.constant 0 : index
    %212 = vector.load %arg1[%c1_110, %c0_111, %c0_112] : memref<2x4x256xf32, #tpu.memory_space<vmem>>, vector<1x4x256xf32>
    %213 = vector.shape_cast %212 : vector<1x4x256xf32> to vector<4x256xf32>
    %c17_i32_113 = arith.constant 17 : i32
    %214 = tpu.dynamic_rotate %213 by %c17_i32_113 dim 1 : vector<4x256xf32>, i32 -> vector<4x256xf32>
    %215 = vector.extract_strided_slice %0 {offsets = [0, 0], sizes = [1, 256], strides = [1, 1]} : vector<9x256xf32> to vector<1x256xf32>
    %216 = vector.broadcast %215 : vector<1x256xf32> to vector<4x256xf32>
    %217 = arith.mulf %214, %216 : vector<4x256xf32>
    %cst_114 = arith.constant dense<0.000000e+00> : vector<8x256xf32>
    %218 = tpu.matmul %7, %217, %cst_114 {dimension_numbers = #tpu.dot_dimension_numbers<[1], [0], [0], [1], [0, 0, 1, 1], [], []>} : vector<8x4xf32>, vector<4x256xf32>, vector<8x256xf32> -> vector<8x256xf32>
    %c16_i32_115 = arith.constant 16 : i32
    %219 = tpu.dynamic_rotate %213 by %c16_i32_115 dim 1 : vector<4x256xf32>, i32 -> vector<4x256xf32>
    %220 = vector.extract_strided_slice %0 {offsets = [1, 0], sizes = [1, 256], strides = [1, 1]} : vector<9x256xf32> to vector<1x256xf32>
    %221 = vector.broadcast %220 : vector<1x256xf32> to vector<4x256xf32>
    %222 = arith.mulf %219, %221 : vector<4x256xf32>
    %cst_116 = arith.constant dense<0.000000e+00> : vector<8x256xf32>
    %223 = tpu.matmul %9, %222, %cst_116 {dimension_numbers = #tpu.dot_dimension_numbers<[1], [0], [0], [1], [0, 0, 1, 1], [], []>} : vector<8x4xf32>, vector<4x256xf32>, vector<8x256xf32> -> vector<8x256xf32>
    %224 = arith.addf %218, %223 : vector<8x256xf32>
    %c15_i32_117 = arith.constant 15 : i32
    %225 = tpu.dynamic_rotate %213 by %c15_i32_117 dim 1 : vector<4x256xf32>, i32 -> vector<4x256xf32>
    %226 = vector.extract_strided_slice %0 {offsets = [2, 0], sizes = [1, 256], strides = [1, 1]} : vector<9x256xf32> to vector<1x256xf32>
    %227 = vector.broadcast %226 : vector<1x256xf32> to vector<4x256xf32>
    %228 = arith.mulf %225, %227 : vector<4x256xf32>
    %cst_118 = arith.constant dense<0.000000e+00> : vector<8x256xf32>
    %229 = tpu.matmul %11, %228, %cst_118 {dimension_numbers = #tpu.dot_dimension_numbers<[1], [0], [0], [1], [0, 0, 1, 1], [], []>} : vector<8x4xf32>, vector<4x256xf32>, vector<8x256xf32> -> vector<8x256xf32>
    %230 = arith.addf %224, %229 : vector<8x256xf32>
    %c1_i32_119 = arith.constant 1 : i32
    %231 = tpu.dynamic_rotate %213 by %c1_i32_119 dim 1 : vector<4x256xf32>, i32 -> vector<4x256xf32>
    %232 = vector.extract_strided_slice %0 {offsets = [3, 0], sizes = [1, 256], strides = [1, 1]} : vector<9x256xf32> to vector<1x256xf32>
    %233 = vector.broadcast %232 : vector<1x256xf32> to vector<4x256xf32>
    %234 = arith.mulf %231, %233 : vector<4x256xf32>
    %cst_120 = arith.constant dense<0.000000e+00> : vector<8x256xf32>
    %235 = tpu.matmul %13, %234, %cst_120 {dimension_numbers = #tpu.dot_dimension_numbers<[1], [0], [0], [1], [0, 0, 1, 1], [], []>} : vector<8x4xf32>, vector<4x256xf32>, vector<8x256xf32> -> vector<8x256xf32>
    %236 = arith.addf %230, %235 : vector<8x256xf32>
    %cst_121 = arith.constant dense<0.000000e+00> : vector<8x256xf32>
    %237 = tpu.matmul %15, %213, %cst_121 {dimension_numbers = #tpu.dot_dimension_numbers<[1], [0], [0], [1], [0, 0, 1, 1], [], []>} : vector<8x4xf32>, vector<4x256xf32>, vector<8x256xf32> -> vector<8x256xf32>
    %238 = arith.addf %236, %237 : vector<8x256xf32>
    %c255_i32_122 = arith.constant 255 : i32
    %239 = tpu.dynamic_rotate %213 by %c255_i32_122 dim 1 : vector<4x256xf32>, i32 -> vector<4x256xf32>
    %240 = vector.extract_strided_slice %0 {offsets = [5, 0], sizes = [1, 256], strides = [1, 1]} : vector<9x256xf32> to vector<1x256xf32>
    %241 = vector.broadcast %240 : vector<1x256xf32> to vector<4x256xf32>
    %242 = arith.mulf %239, %241 : vector<4x256xf32>
    %cst_123 = arith.constant dense<0.000000e+00> : vector<8x256xf32>
    %243 = tpu.matmul %17, %242, %cst_123 {dimension_numbers = #tpu.dot_dimension_numbers<[1], [0], [0], [1], [0, 0, 1, 1], [], []>} : vector<8x4xf32>, vector<4x256xf32>, vector<8x256xf32> -> vector<8x256xf32>
    %244 = arith.addf %238, %243 : vector<8x256xf32>
    %c241_i32_124 = arith.constant 241 : i32
    %245 = tpu.dynamic_rotate %213 by %c241_i32_124 dim 1 : vector<4x256xf32>, i32 -> vector<4x256xf32>
    %246 = vector.extract_strided_slice %0 {offsets = [6, 0], sizes = [1, 256], strides = [1, 1]} : vector<9x256xf32> to vector<1x256xf32>
    %247 = vector.broadcast %246 : vector<1x256xf32> to vector<4x256xf32>
    %248 = arith.mulf %245, %247 : vector<4x256xf32>
    %cst_125 = arith.constant dense<0.000000e+00> : vector<8x256xf32>
    %249 = tpu.matmul %19, %248, %cst_125 {dimension_numbers = #tpu.dot_dimension_numbers<[1], [0], [0], [1], [0, 0, 1, 1], [], []>} : vector<8x4xf32>, vector<4x256xf32>, vector<8x256xf32> -> vector<8x256xf32>
    %250 = arith.addf %244, %249 : vector<8x256xf32>
    %c240_i32_126 = arith.constant 240 : i32
    %251 = tpu.dynamic_rotate %213 by %c240_i32_126 dim 1 : vector<4x256xf32>, i32 -> vector<4x256xf32>
    %252 = vector.extract_strided_slice %0 {offsets = [7, 0], sizes = [1, 256], strides = [1, 1]} : vector<9x256xf32> to vector<1x256xf32>
    %253 = vector.broadcast %252 : vector<1x256xf32> to vector<4x256xf32>
    %254 = arith.mulf %251, %253 : vector<4x256xf32>
    %cst_127 = arith.constant dense<0.000000e+00> : vector<8x256xf32>
    %255 = tpu.matmul %21, %254, %cst_127 {dimension_numbers = #tpu.dot_dimension_numbers<[1], [0], [0], [1], [0, 0, 1, 1], [], []>} : vector<8x4xf32>, vector<4x256xf32>, vector<8x256xf32> -> vector<8x256xf32>
    %256 = arith.addf %250, %255 : vector<8x256xf32>
    %c239_i32_128 = arith.constant 239 : i32
    %257 = tpu.dynamic_rotate %213 by %c239_i32_128 dim 1 : vector<4x256xf32>, i32 -> vector<4x256xf32>
    %258 = vector.extract_strided_slice %0 {offsets = [8, 0], sizes = [1, 256], strides = [1, 1]} : vector<9x256xf32> to vector<1x256xf32>
    %259 = vector.broadcast %258 : vector<1x256xf32> to vector<4x256xf32>
    %260 = arith.mulf %257, %259 : vector<4x256xf32>
    %cst_129 = arith.constant dense<0.000000e+00> : vector<8x256xf32>
    %261 = tpu.matmul %23, %260, %cst_129 {dimension_numbers = #tpu.dot_dimension_numbers<[1], [0], [0], [1], [0, 0, 1, 1], [], []>} : vector<8x4xf32>, vector<4x256xf32>, vector<8x256xf32> -> vector<8x256xf32>
    %262 = arith.addf %256, %261 : vector<8x256xf32>
    %263 = vector.broadcast %2 : vector<8x1xf32> to vector<8x256xf32>
    %264 = arith.addf %262, %263 : vector<8x256xf32>
    %c1_i32_130 = arith.constant 1 : i32
    %265 = arith.addi %44, %c1_i32_130 : i32
    %266 = arith.index_cast %265 : i32 to index
    %c0_131 = arith.constant 0 : index
    %c0_132 = arith.constant 0 : index
    %267 = vector.load %arg5[%266, %c0_131, %c0_132] : memref<2x8x1xf32, #tpu.memory_space<vmem>>, vector<1x8x1xf32>
    %268 = vector.shape_cast %267 : vector<1x8x1xf32> to vector<8x1xf32>
    %c1_i32_133 = arith.constant 1 : i32
    %269 = arith.addi %44, %c1_i32_133 : i32
    %270 = arith.index_cast %269 : i32 to index
    %c0_134 = arith.constant 0 : index
    %c0_135 = arith.constant 0 : index
    %271 = vector.load %arg6[%270, %c0_134, %c0_135] : memref<2x8x1xf32, #tpu.memory_space<vmem>>, vector<1x8x1xf32>
    %272 = vector.shape_cast %271 : vector<1x8x1xf32> to vector<8x1xf32>
    %cst_136 = arith.constant dense<0.000000e+00> : vector<8xf32>
    %273 = vector.multi_reduction <add>, %264, %cst_136 [1] : vector<8x256xf32> to vector<8xf32>
    %274 = vector.shape_cast %273 : vector<8xf32> to vector<8x1xf32>
    %cst_137 = arith.constant dense<0.000000e+00> : vector<8x1xf32>
    %275 = tpu.matmul %1, %274, %cst_137 {dimension_numbers = #tpu.dot_dimension_numbers<[1], [0], [0], [1], [0, 0, 1, 1], [], []>} : vector<8x8xf32>, vector<8x1xf32>, vector<8x1xf32> -> vector<8x1xf32>
    %276 = vector.broadcast %275 : vector<8x1xf32> to vector<8x256xf32>
    %277 = arith.subf %264, %276 : vector<8x256xf32>
    %278 = arith.mulf %277, %277 : vector<8x256xf32>
    %cst_138 = arith.constant dense<0.000000e+00> : vector<8xf32>
    %279 = vector.multi_reduction <add>, %278, %cst_138 [1] : vector<8x256xf32> to vector<8xf32>
    %280 = vector.shape_cast %279 : vector<8xf32> to vector<8x1xf32>
    %cst_139 = arith.constant dense<0.000000e+00> : vector<8x1xf32>
    %281 = tpu.matmul %1, %280, %cst_139 {dimension_numbers = #tpu.dot_dimension_numbers<[1], [0], [0], [1], [0, 0, 1, 1], [], []>} : vector<8x8xf32>, vector<8x1xf32>, vector<8x1xf32> -> vector<8x1xf32>
    %cst_140 = arith.constant 9.99999974E-6 : f32
    %282 = vector.broadcast %cst_140 : f32 to vector<8x1xf32>
    %283 = arith.addf %281, %282 : vector<8x1xf32>
    %284 = math.rsqrt %283 : vector<8x1xf32>
    %285 = vector.broadcast %284 : vector<8x1xf32> to vector<8x256xf32>
    %286 = arith.mulf %277, %285 : vector<8x256xf32>
    %287 = vector.broadcast %268 : vector<8x1xf32> to vector<8x256xf32>
    %288 = arith.mulf %286, %287 : vector<8x256xf32>
    %289 = vector.broadcast %272 : vector<8x1xf32> to vector<8x256xf32>
    %290 = arith.addf %288, %289 : vector<8x256xf32>
    %291 = arith.negf %290 : vector<8x256xf32>
    %292 = math.exp %291 : vector<8x256xf32>
    %cst_141 = arith.constant 1.000000e+00 : f32
    %293 = vector.broadcast %cst_141 : f32 to vector<8x256xf32>
    %294 = arith.addf %293, %292 : vector<8x256xf32>
    %295 = arith.divf %293, %294 : vector<8x256xf32>
    %296 = arith.mulf %290, %295 : vector<8x256xf32>
    %c17_i32_142 = arith.constant 17 : i32
    %297 = tpu.dynamic_rotate %296 by %c17_i32_142 dim 1 : vector<8x256xf32>, i32 -> vector<8x256xf32>
    %298 = vector.extract_strided_slice %0 {offsets = [0, 0], sizes = [1, 256], strides = [1, 1]} : vector<9x256xf32> to vector<1x256xf32>
    %299 = vector.broadcast %298 : vector<1x256xf32> to vector<8x256xf32>
    %300 = arith.mulf %297, %299 : vector<8x256xf32>
    %cst_143 = arith.constant dense<0.000000e+00> : vector<8x256xf32>
    %301 = tpu.matmul %25, %300, %cst_143 {dimension_numbers = #tpu.dot_dimension_numbers<[1], [0], [0], [1], [0, 0, 1, 1], [], []>} : vector<8x8xf32>, vector<8x256xf32>, vector<8x256xf32> -> vector<8x256xf32>
    %c16_i32_144 = arith.constant 16 : i32
    %302 = tpu.dynamic_rotate %296 by %c16_i32_144 dim 1 : vector<8x256xf32>, i32 -> vector<8x256xf32>
    %303 = vector.extract_strided_slice %0 {offsets = [1, 0], sizes = [1, 256], strides = [1, 1]} : vector<9x256xf32> to vector<1x256xf32>
    %304 = vector.broadcast %303 : vector<1x256xf32> to vector<8x256xf32>
    %305 = arith.mulf %302, %304 : vector<8x256xf32>
    %cst_145 = arith.constant dense<0.000000e+00> : vector<8x256xf32>
    %306 = tpu.matmul %27, %305, %cst_145 {dimension_numbers = #tpu.dot_dimension_numbers<[1], [0], [0], [1], [0, 0, 1, 1], [], []>} : vector<8x8xf32>, vector<8x256xf32>, vector<8x256xf32> -> vector<8x256xf32>
    %307 = arith.addf %301, %306 : vector<8x256xf32>
    %c15_i32_146 = arith.constant 15 : i32
    %308 = tpu.dynamic_rotate %296 by %c15_i32_146 dim 1 : vector<8x256xf32>, i32 -> vector<8x256xf32>
    %309 = vector.extract_strided_slice %0 {offsets = [2, 0], sizes = [1, 256], strides = [1, 1]} : vector<9x256xf32> to vector<1x256xf32>
    %310 = vector.broadcast %309 : vector<1x256xf32> to vector<8x256xf32>
    %311 = arith.mulf %308, %310 : vector<8x256xf32>
    %cst_147 = arith.constant dense<0.000000e+00> : vector<8x256xf32>
    %312 = tpu.matmul %29, %311, %cst_147 {dimension_numbers = #tpu.dot_dimension_numbers<[1], [0], [0], [1], [0, 0, 1, 1], [], []>} : vector<8x8xf32>, vector<8x256xf32>, vector<8x256xf32> -> vector<8x256xf32>
    %313 = arith.addf %307, %312 : vector<8x256xf32>
    %c1_i32_148 = arith.constant 1 : i32
    %314 = tpu.dynamic_rotate %296 by %c1_i32_148 dim 1 : vector<8x256xf32>, i32 -> vector<8x256xf32>
    %315 = vector.extract_strided_slice %0 {offsets = [3, 0], sizes = [1, 256], strides = [1, 1]} : vector<9x256xf32> to vector<1x256xf32>
    %316 = vector.broadcast %315 : vector<1x256xf32> to vector<8x256xf32>
    %317 = arith.mulf %314, %316 : vector<8x256xf32>
    %cst_149 = arith.constant dense<0.000000e+00> : vector<8x256xf32>
    %318 = tpu.matmul %31, %317, %cst_149 {dimension_numbers = #tpu.dot_dimension_numbers<[1], [0], [0], [1], [0, 0, 1, 1], [], []>} : vector<8x8xf32>, vector<8x256xf32>, vector<8x256xf32> -> vector<8x256xf32>
    %319 = arith.addf %313, %318 : vector<8x256xf32>
    %cst_150 = arith.constant dense<0.000000e+00> : vector<8x256xf32>
    %320 = tpu.matmul %33, %296, %cst_150 {dimension_numbers = #tpu.dot_dimension_numbers<[1], [0], [0], [1], [0, 0, 1, 1], [], []>} : vector<8x8xf32>, vector<8x256xf32>, vector<8x256xf32> -> vector<8x256xf32>
    %321 = arith.addf %319, %320 : vector<8x256xf32>
    %c255_i32_151 = arith.constant 255 : i32
    %322 = tpu.dynamic_rotate %296 by %c255_i32_151 dim 1 : vector<8x256xf32>, i32 -> vector<8x256xf32>
    %323 = vector.extract_strided_slice %0 {offsets = [5, 0], sizes = [1, 256], strides = [1, 1]} : vector<9x256xf32> to vector<1x256xf32>
    %324 = vector.broadcast %323 : vector<1x256xf32> to vector<8x256xf32>
    %325 = arith.mulf %322, %324 : vector<8x256xf32>
    %cst_152 = arith.constant dense<0.000000e+00> : vector<8x256xf32>
    %326 = tpu.matmul %35, %325, %cst_152 {dimension_numbers = #tpu.dot_dimension_numbers<[1], [0], [0], [1], [0, 0, 1, 1], [], []>} : vector<8x8xf32>, vector<8x256xf32>, vector<8x256xf32> -> vector<8x256xf32>
    %327 = arith.addf %321, %326 : vector<8x256xf32>
    %c241_i32_153 = arith.constant 241 : i32
    %328 = tpu.dynamic_rotate %296 by %c241_i32_153 dim 1 : vector<8x256xf32>, i32 -> vector<8x256xf32>
    %329 = vector.extract_strided_slice %0 {offsets = [6, 0], sizes = [1, 256], strides = [1, 1]} : vector<9x256xf32> to vector<1x256xf32>
    %330 = vector.broadcast %329 : vector<1x256xf32> to vector<8x256xf32>
    %331 = arith.mulf %328, %330 : vector<8x256xf32>
    %cst_154 = arith.constant dense<0.000000e+00> : vector<8x256xf32>
    %332 = tpu.matmul %37, %331, %cst_154 {dimension_numbers = #tpu.dot_dimension_numbers<[1], [0], [0], [1], [0, 0, 1, 1], [], []>} : vector<8x8xf32>, vector<8x256xf32>, vector<8x256xf32> -> vector<8x256xf32>
    %333 = arith.addf %327, %332 : vector<8x256xf32>
    %c240_i32_155 = arith.constant 240 : i32
    %334 = tpu.dynamic_rotate %296 by %c240_i32_155 dim 1 : vector<8x256xf32>, i32 -> vector<8x256xf32>
    %335 = vector.extract_strided_slice %0 {offsets = [7, 0], sizes = [1, 256], strides = [1, 1]} : vector<9x256xf32> to vector<1x256xf32>
    %336 = vector.broadcast %335 : vector<1x256xf32> to vector<8x256xf32>
    %337 = arith.mulf %334, %336 : vector<8x256xf32>
    %cst_156 = arith.constant dense<0.000000e+00> : vector<8x256xf32>
    %338 = tpu.matmul %39, %337, %cst_156 {dimension_numbers = #tpu.dot_dimension_numbers<[1], [0], [0], [1], [0, 0, 1, 1], [], []>} : vector<8x8xf32>, vector<8x256xf32>, vector<8x256xf32> -> vector<8x256xf32>
    %339 = arith.addf %333, %338 : vector<8x256xf32>
    %c239_i32_157 = arith.constant 239 : i32
    %340 = tpu.dynamic_rotate %296 by %c239_i32_157 dim 1 : vector<8x256xf32>, i32 -> vector<8x256xf32>
    %341 = vector.extract_strided_slice %0 {offsets = [8, 0], sizes = [1, 256], strides = [1, 1]} : vector<9x256xf32> to vector<1x256xf32>
    %342 = vector.broadcast %341 : vector<1x256xf32> to vector<8x256xf32>
    %343 = arith.mulf %340, %342 : vector<8x256xf32>
    %cst_158 = arith.constant dense<0.000000e+00> : vector<8x256xf32>
    %344 = tpu.matmul %41, %343, %cst_158 {dimension_numbers = #tpu.dot_dimension_numbers<[1], [0], [0], [1], [0, 0, 1, 1], [], []>} : vector<8x8xf32>, vector<8x256xf32>, vector<8x256xf32> -> vector<8x256xf32>
    %345 = arith.addf %339, %344 : vector<8x256xf32>
    %346 = vector.broadcast %3 : vector<8x1xf32> to vector<8x256xf32>
    %347 = arith.addf %345, %346 : vector<8x256xf32>
    %cst_159 = arith.constant dense<0.000000e+00> : vector<8xf32>
    %348 = vector.multi_reduction <add>, %347, %cst_159 [1] : vector<8x256xf32> to vector<8xf32>
    %349 = vector.shape_cast %348 : vector<8xf32> to vector<8x1xf32>
    %cst_160 = arith.constant dense<0.000000e+00> : vector<8x1xf32>
    %350 = tpu.matmul %1, %349, %cst_160 {dimension_numbers = #tpu.dot_dimension_numbers<[1], [0], [0], [1], [0, 0, 1, 1], [], []>} : vector<8x8xf32>, vector<8x1xf32>, vector<8x1xf32> -> vector<8x1xf32>
    %351 = vector.broadcast %350 : vector<8x1xf32> to vector<8x256xf32>
    %352 = arith.subf %347, %351 : vector<8x256xf32>
    %353 = arith.mulf %352, %352 : vector<8x256xf32>
    %cst_161 = arith.constant dense<0.000000e+00> : vector<8xf32>
    %354 = vector.multi_reduction <add>, %353, %cst_161 [1] : vector<8x256xf32> to vector<8xf32>
    %355 = vector.shape_cast %354 : vector<8xf32> to vector<8x1xf32>
    %cst_162 = arith.constant dense<0.000000e+00> : vector<8x1xf32>
    %356 = tpu.matmul %1, %355, %cst_162 {dimension_numbers = #tpu.dot_dimension_numbers<[1], [0], [0], [1], [0, 0, 1, 1], [], []>} : vector<8x8xf32>, vector<8x1xf32>, vector<8x1xf32> -> vector<8x1xf32>
    %cst_163 = arith.constant 9.99999974E-6 : f32
    %357 = vector.broadcast %cst_163 : f32 to vector<8x1xf32>
    %358 = arith.addf %356, %357 : vector<8x1xf32>
    %359 = math.rsqrt %358 : vector<8x1xf32>
    %360 = vector.broadcast %359 : vector<8x1xf32> to vector<8x256xf32>
    %361 = arith.mulf %352, %360 : vector<8x256xf32>
    %362 = vector.broadcast %4 : vector<8x1xf32> to vector<8x256xf32>
    %363 = arith.mulf %361, %362 : vector<8x256xf32>
    %364 = vector.broadcast %5 : vector<8x1xf32> to vector<8x256xf32>
    %365 = arith.addf %363, %364 : vector<8x256xf32>
    %366 = arith.negf %365 : vector<8x256xf32>
    %367 = math.exp %366 : vector<8x256xf32>
    %cst_164 = arith.constant 1.000000e+00 : f32
    %368 = vector.broadcast %cst_164 : f32 to vector<8x256xf32>
    %369 = arith.addf %368, %367 : vector<8x256xf32>
    %370 = arith.divf %368, %369 : vector<8x256xf32>
    %371 = arith.mulf %365, %370 : vector<8x256xf32>
    %cst_165 = arith.constant dense<0.000000e+00> : vector<8x256xf32>
    %372 = tpu.matmul %42, %213, %cst_165 {dimension_numbers = #tpu.dot_dimension_numbers<[1], [0], [0], [1], [0, 0, 1, 1], [], []>} : vector<8x4xf32>, vector<4x256xf32>, vector<8x256xf32> -> vector<8x256xf32>
    %373 = vector.broadcast %43 : vector<8x1xf32> to vector<8x256xf32>
    %374 = arith.addf %372, %373 : vector<8x256xf32>
    %375 = arith.addf %371, %374 : vector<8x256xf32>
    %c1_166 = arith.constant 1 : index
    %c0_167 = arith.constant 0 : index
    %c0_168 = arith.constant 0 : index
    %376 = vector.load %arg14[%c1_166, %c0_167, %c0_168] : memref<2x8x256xf32, #tpu.memory_space<vmem>>, vector<1x8x256xf32>
    %377 = vector.shape_cast %376 : vector<1x8x256xf32> to vector<8x256xf32>
    %378 = vector.shape_cast %375 : vector<8x256xf32> to vector<1x8x256xf32>
    tpu.vector_store %arg14[%c1_166, %c0_167, %c0_168], %378 {strides = array<i32>} : memref<2x8x256xf32, #tpu.memory_space<vmem>>, vector<1x8x256xf32>,
    return
  }
  func.func @transform_0(%arg0: i32) -> (i32, i32, i32) {
    %c0_i32 = arith.constant 0 : i32
    %c0_i32_0 = arith.constant 0 : i32
    %c0_i32_1 = arith.constant 0 : i32
    return %arg0, %c0_i32, %c0_i32_0 : i32, i32, i32
  }
  func.func @transform_1(%arg0: i32) -> (i32, i32) {
    %c0_i32 = arith.constant 0 : i32
    %c0_i32_0 = arith.constant 0 : i32
    %c0_i32_1 = arith.constant 0 : i32
    return %c0_i32, %c0_i32_0 : i32, i32
  }
  func.func @transform_2(%arg0: i32) -> (i32, i32, i32) {
    %c0_i32 = arith.constant 0 : i32
    %c0_i32_0 = arith.constant 0 : i32
    %c0_i32_1 = arith.constant 0 : i32
    %c0_i32_2 = arith.constant 0 : i32
    return %c0_i32, %c0_i32_0, %c0_i32_1 : i32, i32, i32
  }
  func.func @transform_3(%arg0: i32) -> (i32, i32) {
    %c0_i32 = arith.constant 0 : i32
    %c0_i32_0 = arith.constant 0 : i32
    %c0_i32_1 = arith.constant 0 : i32
    return %c0_i32, %c0_i32_0 : i32, i32
  }
  func.func @transform_4(%arg0: i32) -> (i32, i32, i32) {
    %c0_i32 = arith.constant 0 : i32
    %c0_i32_0 = arith.constant 0 : i32
    %c0_i32_1 = arith.constant 0 : i32
    %c0_i32_2 = arith.constant 0 : i32
    return %c0_i32, %c0_i32_0, %c0_i32_1 : i32, i32, i32
  }
  func.func @transform_5(%arg0: i32) -> (i32, i32, i32) {
    %c0_i32 = arith.constant 0 : i32
    %c0_i32_0 = arith.constant 0 : i32
    %c0_i32_1 = arith.constant 0 : i32
    %c0_i32_2 = arith.constant 0 : i32
    return %c0_i32, %c0_i32_0, %c0_i32_1 : i32, i32, i32
  }
  func.func @transform_6(%arg0: i32) -> (i32, i32, i32) {
    %c0_i32 = arith.constant 0 : i32
    %c0_i32_0 = arith.constant 0 : i32
    %c0_i32_1 = arith.constant 0 : i32
    %c0_i32_2 = arith.constant 0 : i32
    return %c0_i32, %c0_i32_0, %c0_i32_1 : i32, i32, i32
  }
  func.func @transform_7(%arg0: i32) -> (i32, i32) {
    %c0_i32 = arith.constant 0 : i32
    %c0_i32_0 = arith.constant 0 : i32
    %c0_i32_1 = arith.constant 0 : i32
    return %c0_i32, %c0_i32_0 : i32, i32
  }
  func.func @transform_8(%arg0: i32) -> (i32, i32) {
    %c0_i32 = arith.constant 0 : i32
    %c0_i32_0 = arith.constant 0 : i32
    %c0_i32_1 = arith.constant 0 : i32
    return %c0_i32, %c0_i32_0 : i32, i32
  }
  func.func @transform_9(%arg0: i32) -> (i32, i32) {
    %c0_i32 = arith.constant 0 : i32
    %c0_i32_0 = arith.constant 0 : i32
    %c0_i32_1 = arith.constant 0 : i32
    return %c0_i32, %c0_i32_0 : i32, i32
  }
  func.func @transform_10(%arg0: i32) -> (i32, i32) {
    %c0_i32 = arith.constant 0 : i32
    %c0_i32_0 = arith.constant 0 : i32
    %c0_i32_1 = arith.constant 0 : i32
    return %c0_i32, %c0_i32_0 : i32, i32
  }
  func.func @transform_11(%arg0: i32) -> (i32, i32) {
    %c0_i32 = arith.constant 0 : i32
    %c0_i32_0 = arith.constant 0 : i32
    %c0_i32_1 = arith.constant 0 : i32
    return %c0_i32, %c0_i32_0 : i32, i32
  }
  func.func @transform_12(%arg0: i32) -> (i32, i32) {
    %c0_i32 = arith.constant 0 : i32
    %c0_i32_0 = arith.constant 0 : i32
    %c0_i32_1 = arith.constant 0 : i32
    return %c0_i32, %c0_i32_0 : i32, i32
  }
  func.func @transform_13(%arg0: i32) -> (i32, i32, i32) {
    %c0_i32 = arith.constant 0 : i32
    %c0_i32_0 = arith.constant 0 : i32
    %c0_i32_1 = arith.constant 0 : i32
    return %arg0, %c0_i32, %c0_i32_0 : i32, i32, i32
  }
}

</mosaic_0001>

<bundles_post_ra>
// kernel: resnet_block_forward.1
= control target key start
LH: loop header
LB: loop body
LE: loop exit
PB: predicated region body
PF: predicated region fallthrough
CT: control target
= control target key end

     0   :  { %v4445_v1 = vmov 0.0   ;;  %s4446_s27 = smov 17   ;;  %s4447_s28 = smov 16   ;;  %v4454_v3 = vmov 0   ;;  %v98_v5 = vlaneseq  ;;  %vm134_vm2 = vcmask 1043456   ;;  %s5311_s0 = inlined_call_operand.vmem [shape: f32[2,4,256], index: 0, kind: input, shape index: {}]   ;;  %s5312_s3 = inlined_call_operand.vmem [shape: f32[8,1], index: 3, kind: input, shape index: {}]   ;;  %s5313_s1 = inlined_call_operand.vmem [shape: f32[9,256], index: 1, kind: input, shape index: {}]   ;;  %s5314_s2 = inlined_call_operand.vmem [shape: f32[9,8,4], index: 2, kind: input, shape index: {}]   ;;  %s5315_s10 = inlined_call_operand.vmem [shape: f32[8,8], index: 10, kind: input, shape index: {}]   ;;  %s5316_s4 = inlined_call_operand.vmem [shape: f32[2,8,1], index: 4, kind: input, shape index: {}]   ;;  %s5317_s5 = inlined_call_operand.vmem [shape: f32[2,8,1], index: 5, kind: input, shape index: {}]   ;;  %s5318_s7 = inlined_call_operand.vmem [shape: f32[8,1], index: 7, kind: input, shape index: {}]   ;;  %s5319_s6 = inlined_call_operand.vmem [shape: f32[9,8,8], index: 6, kind: input, shape index: {}]   ;;  %s5320_s11 = inlined_call_operand.vmem [shape: f32[8,4], index: 11, kind: input, shape index: {}]   ;;  %s5321_s8 = inlined_call_operand.vmem [shape: f32[8,1], index: 8, kind: input, shape index: {}]   ;;  %s5322_s9 = inlined_call_operand.vmem [shape: f32[8,1], index: 9, kind: input, shape index: {}]   ;;  %s5323_s12 = inlined_call_operand.vmem [shape: f32[8,1], index: 12, kind: input, shape index: {}]   ;;  %s5324_s13 = inlined_call_operand.vmem [shape: f32[2,8,256], index: 13, kind: output, shape index: {}]  }
   0x1   :  { %v4529_v0 = vld [vmem:[%s5311_s0] sm:$0xff]  ;;  %205 = vmatprep.mubr.f32.mxu0 %v4445_v1  ;;  %4286 = vmatprep.subr.mxu1 %v4445_v1  ;;  %s4448_s29 = smov 15   ;;  %s4449_s30 = smov 1   ;;  %v4586_v11 = vld [vmem:[%s5313_s1 + $0x8] sm:$0xff]  ;;  %vm130_vm4 = vcmask 31744   ;;  %v4668_v48 = vld [vmem:[%s5314_s2 + $0x10] sm:$0xff] }
   0x2   :  { %94 = vrot.lane.b32.xlu1 %v4529_v0, %s4446_s27  ;;  %113 = vrot.lane.b32.xlu0 %v4529_v0, %s4447_s28  ;;  %v4539_v2 = vcombine.high %v4529_v0, %v4529_v0  ;;  %s4450_s14 = smov 127   ;;  %s4451_s15 = smov 113   ;;  %v49_v4 = vld [vmem:[%s5312_s3] sm:$0xff]  ;;  %v4572_v6 = vshrl.u32 %v98_v5, 7  ;;  %v4574_v7 = vand.u32 127, %v98_v5  ;;  %v4622_v30 = vld [vmem:[%s5314_s2 + $0x8] sm:$0xff] }
   0x3   :  { %s4452_s16 = smov 112   ;;  %s4453_s17 = smov 111   ;;  %4401 = vset.pattern.permute.xlu0 %v4454_v3  ;;  %4402 = vset.pattern.permute.xlu1 %v4454_v3  ;;  %v4581_v10 = vld [vmem:[%s5313_s1] sm:$0xff]  ;;  %v4686_v54 = vld [vmem:[%s5314_s2 + $0x18] sm:$0xff]  ;;  %vm4455_vm10 = vmmov 0   ;;  %vm981_vm11 = vcmask 64512  }
   0x4   :  { %v105_v8 = vsub.s32 0, %v4572_v6  ;;  %v122_v9 = vsub.s32 1, %v4572_v6  ;;  %vm100_vm0 = vcmp.lt.s32.totalorder %v4574_v7, 17  ;;  %vm117_vm1 = vcmp.lt.s32.totalorder %v4574_v7, 16  ;;  %v4651_v43 = vld [vmem:[%s5314_s2] sm:$0xff]  ;;  %4288 = vmatprep.mubr.msk.f32.mxu1 %vm4455_vm10, %v4445_v1 }
   0x5   :  { %v301_v17 = vsub.s32 2, %v4572_v6  ;;  %vm296_vm3 = vcmp.lt.s32.totalorder %v4574_v7, 15  ;;  %v400_v33 = vsub.s32 3, %v4572_v6  ;;  %vm395_vm5 = vcmp.lt.s32.totalorder %v4574_v7, 1  ;;  %v4711_v3 = vld [vmem:[%s5314_s2 + $0x20] sm:$0xff] }
   0x6   :  { %96 = vrot.lane.b32.xlu1 %v4539_v2, %s4446_s27  ;;  %115 = vrot.lane.b32.xlu0 %v4539_v2, %s4447_s28  ;;  %v4591_v14 = vrot.slane %v4586_v11, %v105_v8  ;;  %v4594_v15 = vrot.slane %v4581_v10, %v122_v9  ;;  %v4597_v16 = vrot.slane %v4586_v11, %v122_v9  ;;  %v579_v49 = vsub.s32 5, %v4572_v6 }
   0x7   :  { %v4601_v18 = vrot.slane %v4581_v10, %v105_v8  ;;  %v4616_v28 = vrot.slane %v4586_v11, %v301_v17  ;;  %v4636_v36 = vrot.slane %v4581_v10, %v301_v17  ;;  %v4643_v39 = vrot.slane %v4586_v11, %v400_v33 }
   0x8   :  { %v4658_v45 = vrot.slane %v4581_v10, %v400_v33  ;;  %vm574_vm6 = vcmp.lt.s32.totalorder %v4574_v7, 127  ;;  %v4679_v52 = vrot.slane %v4586_v11, %v579_v49  ;;  %v678_v56 = vsub.s32 6, %v4572_v6 }
   0x9   :  { %vm673_vm7 = vcmp.lt.s32.totalorder %v4574_v7, 113  ;;  %v4696_v59 = vrot.slane %v4581_v10, %v579_v49  ;;  %v777_v5 = vsub.s32 7, %v4572_v6  ;;  %vm772_vm8 = vcmp.lt.s32.totalorder %v4574_v7, 112 }
   0xa   :  { %294 = vrot.lane.b32.xlu1 %v4539_v2, %s4448_s29  ;;  %292 = vrot.lane.b32.xlu0 %v4529_v0, %s4448_s29  ;;  %v4703_v61 = vrot.slane %v4586_v11, %v678_v56  ;;  %vm871_vm9 = vcmp.lt.s32.totalorder %v4574_v7, 111 }
   0xb   :  { %v4727_v6 = vrot.slane %v4586_v11, %v777_v5 }
   0xe   :  { %393 = vrot.lane.b32.xlu1 %v4539_v2, %s4449_s30  ;;  %391 = vrot.lane.b32.xlu0 %v4529_v0, %s4449_s30 }
  0x12   :  { %572 = vrot.lane.b32.xlu1 %v4539_v2, %s4450_s14  ;;  %570 = vrot.lane.b32.xlu0 %v4529_v0, %s4450_s14 }
  0x16   :  { %671 = vrot.lane.b32.xlu1 %v4539_v2, %s4451_s15  ;;  %669 = vrot.lane.b32.xlu0 %v4529_v0, %s4451_s15 }
  0x1a   :  { %770 = vrot.lane.b32.xlu1 %v4539_v2, %s4452_s16  ;;  %768 = vrot.lane.b32.xlu0 %v4529_v0, %s4452_s16 }
  0x1e   :  { %869 = vrot.lane.b32.xlu1 %v4539_v2, %s4453_s17  ;;  %867 = vrot.lane.b32.xlu0 %v4529_v0, %s4453_s17 }
  0x22   :  { %968 = vperm.xlu0 %4401, %v49_v4  }
  0x74   :  { %v95_v12 = vpop.permute.xlu1 %94  ;;  %v114_v13 = vpop.permute.xlu0 %113 }
  0x78   :  { %v97_v19 = vpop.permute.xlu1 %96  ;;  %v116_v20 = vpop.permute.xlu0 %115 }
  0x79   :  { %v101_v21 = vsel %vm100_vm0, %v95_v12, %v97_v19  ;;  %v102_v22 = vsel %vm100_vm0, %v97_v19, %v95_v12  ;;  %v118_v23 = vsel %vm117_vm1, %v114_v13, %v116_v20  ;;  %v119_v24 = vsel %vm117_vm1, %v116_v20, %v114_v13  ;;  %v4735_v20 = vld [vmem:[%s5314_s2 + $0x28] sm:$0xff] }
  0x7a   :  { %v112_v25 = vmul.f32 %v4591_v14, %v101_v21  ;;  %v128_v26 = vmul.f32 %v4594_v15, %v119_v24  ;;  %v129_v27 = vmul.f32 %v4597_v16, %v118_v23  ;;  %v111_v29 = vmul.f32 %v4601_v18, %v102_v22 }
  0x7b   :  { %v4720_v12 = vrot.slane %v4581_v10, %v678_v56  ;;  %v4743_v23 = vrot.slane %v4581_v10, %v777_v5  ;;  %v4760_v10 = vld [vmem:[%s5314_s2 + $0x30] sm:$0xff] }
  0x7c   :  { %4169 = vmatprep.subr.msk.mxu0 %vm134_vm2, %v129_v27  ;;  %v295_v31 = vpop.permute.xlu1 %294  ;;  %v293_v32 = vpop.permute.xlu0 %292 }
  0x7d   :  { %4170 = vmatpush1.msk.msra.mxu0 %vm134_vm2, %v128_v26  ;;  %v297_v34 = vsel %vm296_vm3, %v293_v32, %v295_v31  ;;  %v298_v37 = vsel %vm296_vm3, %v295_v31, %v293_v32  ;;  %v4770_v31 = vld [vmem:[%s5313_s1 + $0x10] ss:$0 sm:$0xff] }
  0x7e   :  { %4171 = vmatmul.mubr.msk.f32.vlgmr.msra.gmra.mrb[0].mxu0 %vm130_vm4, %v4622_v30  ;;  %4172 = vmatprep.subr.msk.mxu0 %vm134_vm2, %v112_v25  ;;  %v308_v35 = vmul.f32 %v4616_v28, %v297_v34  ;;  %v307_v42 = vmul.f32 %v4636_v36, %v298_v37  ;;  %v4752_v25 = vld [vmem:[%s5313_s1 + $0x18] ss:$0 sm:$0xff] }
  0x7f   :  { %4173 = vmatpush1.msk.msra.mxu0 %vm134_vm2, %v111_v29  ;;  %285 = vmatprep.mubr.f32.mxu0 %v4445_v1  ;;  %v4779_v34 = vld [vmem:[%s5314_s2 + $0x38] sm:$0xff] }
  0x80   :  { %4175 = vmatprep.subr.msk.mxu0 %vm134_vm2, %v308_v35  ;;  %v394_v38 = vpop.permute.xlu1 %393  ;;  %v392_v40 = vpop.permute.xlu0 %391  ;;  %v4789_v35 = vld [vmem:[%s5314_s2 + $0x40] sm:$0xff] }
  0x81   :  { %v396_v41 = vsel %vm395_vm5, %v392_v40, %v394_v38  ;;  %v397_v46 = vsel %vm395_vm5, %v394_v38, %v392_v40 }
  0x82   :  { %v407_v44 = vmul.f32 %v4643_v39, %v396_v41  ;;  %v406_v47 = vmul.f32 %v4658_v45, %v397_v46  ;;  %v4804_v46 = vld [vmem:[%s5315_s10] sm:$0xff] }
  0x84   :  { %v573_v50 = vpop.permute.xlu1 %572  ;;  %v571_v51 = vpop.permute.xlu0 %570 }
  0x85   :  { %v576_v53 = vsel %vm574_vm6, %v573_v50, %v571_v51  ;;  %v575_v60 = vsel %vm574_vm6, %v571_v51, %v573_v50 }
  0x86   :  { %4174 = vmatmul.mubr.msk.f32.vlgmr.msra.gmra.mrb[0].mxu0 %vm130_vm4, %v4651_v43  ;;  %v586_v55 = vmul.f32 %v4679_v52, %v576_v53  ;;  %v585_v63 = vmul.f32 %v4696_v59, %v575_v60  ;;  %v975_v60 = vld [vmem:[%s5316_s4] sm:$0xff] }
  0x87   :  { %4176 = vmatpush1.msk.msra.mxu0 %vm134_vm2, %v307_v42  ;;  %382 = vmatprep.mubr.f32.mxu0 %v4445_v1 }
  0x88   :  { %4178 = vmatprep.subr.msk.mxu0 %vm134_vm2, %v407_v44  ;;  %v672_v57 = vpop.permute.xlu1 %671  ;;  %v670_v58 = vpop.permute.xlu0 %669 }
  0x89   :  { %v675_v62 = vsel %vm673_vm7, %v672_v57, %v670_v58  ;;  %v674_v13 = vsel %vm673_vm7, %v670_v58, %v672_v57 }
  0x8a   :  { %v685_v4 = vmul.f32 %v4703_v61, %v675_v62  ;;  %v684_v19 = vmul.f32 %v4720_v12, %v674_v13 }
  0x8c   :  { %v771_v8 = vpop.permute.xlu1 %770  ;;  %v769_v9 = vpop.permute.xlu0 %768 }
  0x8d   :  { %v774_v17 = vsel %vm772_vm8, %v771_v8, %v769_v9  ;;  %v773_v24 = vsel %vm772_vm8, %v769_v9, %v771_v8  ;;  %v977_v9 = vld [vmem:[%s5317_s5] sm:$0xff] }
  0x8e   :  { %4177 = vmatmul.mubr.msk.f32.vlgmr.msra.gmra.mrb[0].mxu0 %vm130_vm4, %v4668_v48  ;;  %v784_v21 = vmul.f32 %v4727_v6, %v774_v17  ;;  %v783_v27 = vmul.f32 %v4743_v23, %v773_v24 }
  0x8f   :  { %4179 = vmatpush1.msk.msra.mxu0 %vm134_vm2, %v406_v47  ;;  %481 = vmatprep.mubr.f32.mxu0 %v4445_v1 }
  0x90   :  { %4181 = vmatprep.subr.msk.mxu0 %vm134_vm2, %v4539_v2  ;;  %v870_v22 = vpop.permute.xlu1 %869  ;;  %v868_v11 = vpop.permute.xlu0 %867 }
  0x91   :  { %v873_v26 = vsel %vm871_vm9, %v870_v22, %v868_v11  ;;  %v872_v32 = vsel %vm871_vm9, %v868_v11, %v870_v22 }
  0x92   :  { %v883_v29 = vmul.f32 %v4752_v25, %v873_v26  ;;  %v882_v33 = vmul.f32 %v4770_v31, %v872_v32 }
  0x96   :  { %4180 = vmatmul.mubr.msk.f32.vlgmr.msra.gmra.mrb[0].mxu0 %vm130_vm4, %v4686_v54 }
  0x97   :  { %4182 = vmatpush1.msk.msra.mxu0 %vm134_vm2, %v4529_v0  ;;  %561 = vmatprep.mubr.f32.mxu0 %v4445_v1 }
  0x98   :  { %4184 = vmatprep.subr.msk.mxu0 %vm134_vm2, %v586_v55 }
  0x9e   :  { %4183 = vmatmul.mubr.msk.f32.vlgmr.msra.gmra.mrb[0].mxu0 %vm130_vm4, %v4711_v3 }
  0x9f   :  { %4185 = vmatpush1.msk.msra.mxu0 %vm134_vm2, %v585_v63  ;;  %660 = vmatprep.mubr.f32.mxu0 %v4445_v1 }
  0xa0   :  { %4187 = vmatprep.subr.msk.mxu0 %vm134_vm2, %v685_v4 }
  0xa1   :  { %v4793_v37 = vpop.permute.xlu0 %968 }
  0xa6   :  { %4186 = vmatmul.mubr.msk.f32.vlgmr.msra.gmra.mrb[0].mxu0 %vm130_vm4, %v4735_v20 }
  0xa7   :  { %4188 = vmatpush1.msk.msra.mxu0 %vm134_vm2, %v684_v19  ;;  %759 = vmatprep.mubr.f32.mxu0 %v4445_v1 }
  0xa8   :  { %4190 = vmatprep.subr.msk.mxu0 %vm134_vm2, %v784_v21 }
  0xae   :  { %4189 = vmatmul.mubr.msk.f32.vlgmr.msra.gmra.mrb[0].mxu0 %vm130_vm4, %v4760_v10 }
  0xaf   :  { %4191 = vmatpush1.msk.msra.mxu0 %vm134_vm2, %v783_v27  ;;  %858 = vmatprep.mubr.f32.mxu0 %v4445_v1 }
  0xb0   :  { %4195 = vmatprep.subr.msk.mxu0 %vm134_vm2, %v883_v29 }
  0xb6   :  { %4192 = vmatmul.mubr.msk.f32.vlgmr.msra.gmra.mrb[0].mxu0 %vm130_vm4, %v4779_v34 }
  0xb7   :  { %4196 = vmatpush1.msk.msra.mxu0 %vm134_vm2, %v882_v33  ;;  %957 = vmatprep.mubr.f32.mxu0 %v4445_v1 }
  0xb8   :  { %4296 = vmatprep.subr.mxu0 %v4445_v1 }
  0xbe   :  { %4197 = vmatmul.mubr.msk.f32.vlgmr.msra.gmra.mrb[0].mxu0 %vm130_vm4, %v4789_v35 }
  0xbf   :  { %4298 = vmatprep.mubr.msk.f32.mxu0 %vm4455_vm10, %v4445_v1 }
 0x191   :  { %v959_v38 = vpop.f32.mrb[0].mxu0 }
 0x192   :  { %v961_v40 = vpop.f32.mrb[1].mxu0  ;;  %v971_v41 = vadd.f32 %v4793_v37, %v959_v38 }
 0x193   :  { %v972_v42 = vadd.f32 %v4793_v37, %v961_v40 }
 0x195   :  { %v978_v44 = vadd.f32 %v972_v42, %v971_v41 }
 0x197   :  { %979 = vadd.xlane.f32.xlu1 %v978_v44 }
 0x224   :  { %v980_v47 = vpop.xlane.xlu1 %979 }
 0x225   :  { %4287 = vmatpush3.msra.mxu1 %v980_v47 }
 0x226   :  { %4289 = vmatmul.mubr.msk.f32.vlgmr.msra.gmra.mrb[0].mxu1 %vm981_vm11, %v4804_v46  ;;  %4291 = vmatprep.subr.mxu1 %v4445_v1 }
 0x227   :  { %4293 = vmatprep.mubr.msk.f32.mxu1 %vm4455_vm10, %v4445_v1 }
 0x2f9   :  { %v1051_v49 = vpop.f32.mrb[0].mxu1 }
 0x2fa   :  { %1057 = vperm.xlu0 %4401, %v1051_v49   ;;  %v4290_v50 = vpop.f32.mrb[1].mxu1 }
 0x2fb   :  { %v50_v50 = vld [vmem:[%s5318_s7] sm:$0xff] }
 0x379   :  { %v1058_v51 = vpop.permute.xlu0 %1057 }
 0x37a   :  { %v1060_v53 = vsub.f32 %v971_v41, %v1058_v51  ;;  %v1061_v55 = vsub.f32 %v972_v42, %v1058_v51  ;;  %v4862_v51 = vld [vmem:[%s5311_s0 + $0x8] sm:$0xff] }
 0x37c   :  { %v1062_v56 = vmul.f32 %v1060_v53, %v1060_v53  ;;  %v1063_v57 = vmul.f32 %v1061_v55, %v1061_v55 }
 0x37e   :  { %v1064_v58 = vadd.f32 %v1063_v57, %v1062_v56 }
 0x380   :  { %1065 = vadd.xlane.f32.xlu0 %v1064_v58 }
 0x396   :  { %1147 = vperm.xlu0 %4401, %v975_v60  }
 0x40d   :  { %v1066_v62 = vpop.xlane.xlu0 %1065 }
 0x40e   :  { %4292 = vmatpush3.msra.mxu1 %v1066_v62 }
 0x40f   :  { %4294 = vmatmul.mubr.msk.f32.vlgmr.msra.gmra.mrb[2].mxu1 %vm981_vm11, %v4804_v46 }
 0x410   :  { %1256 = vmatprep.mubr.f32.mxu1 %v4445_v1 }
 0x415   :  { %v1148_v21 = vpop.permute.xlu0 %1147 }
 0x4e2   :  { %v1133_v63 = vpop.f32.mrb[2].mxu1 }
 0x4e3   :  { %v1134_v4 = vadd.f32 1e-05, %v1133_v63  ;;  %v4295_v5 = vpop.f32.mrb[3].mxu1 }
 0x4e5   :  { %4405 = vrsqrt.f32 %v1134_v4  ;;  %v4905_v4 = vld [vmem:[%s5319_s6 + $0x8] sm:$0xff] }
 0x4ef   :  { %v4406_v8 = vpop.eup %4405 }
 0x4f0   :  { %1140 = vperm.xlu1 %4402, %v4406_v8  }
 0x4f4   :  { %1154 = vperm.xlu1 %4402, %v977_v9  }
 0x56f   :  { %v1141_v13 = vpop.permute.xlu1 %1140 }
 0x570   :  { %v1143_v17 = vmul.f32 %v1141_v13, %v1060_v53  ;;  %v1144_v19 = vmul.f32 %v1141_v13, %v1061_v55  ;;  %v4868_v53 = vcombine.high %v4862_v51, %v4862_v51 }
 0x572   :  { %v1150_v22 = vmul.f32 %v1148_v21, %v1143_v17  ;;  %v1151_v11 = vmul.f32 %v1148_v21, %v1144_v19 }
 0x573   :  { %v1155_v24 = vpop.permute.xlu1 %1154 }
 0x574   :  { %v1157_v26 = vadd.f32 %v1155_v24, %v1150_v22  ;;  %v1158_v27 = vadd.f32 %v1155_v24, %v1151_v11 }
 0x576   :  { %v4200_v29 = vmul.f32 -1.442695, %v1157_v26  ;;  %v4201_v32 = vmul.f32 -1.442695, %v1158_v27 }
 0x578   :  { %4407 = vpow2.f32 %v4200_v29 }
 0x579   :  { %4409 = vpow2.f32 %v4201_v32 }
 0x582   :  { %v4408_v33 = vpop.eup %4407 }
 0x583   :  { %v4410_v38 = vpop.eup %4409  ;;  %v1165_v40 = vadd.f32 1.0, %v4408_v33 }
 0x584   :  { %v1166_v41 = vadd.f32 1.0, %v4410_v38 }
 0x585   :  { %4411 = vrcp.f32 %v1165_v40 }
 0x586   :  { %4413 = vrcp.f32 %v1166_v41  ;;  %v4938_v41 = vld [vmem:[%s5319_s6 + $0x10] sm:$0xff] }
 0x58f   :  { %v4412_v42 = vpop.eup %4411 }
 0x590   :  { %v4820_v44 = vmul.f32 %v4412_v42, %v1157_v26  ;;  %v4414_v47 = vpop.eup %4413  ;;  %v4924_v26 = vld [vmem:[%s5319_s6] sm:$0xff] }
 0x591   :  { %v4826_v49 = vmul.f32 %v4414_v47, %v1158_v27 }
 0x592   :  { %1173 = vrot.lane.b32.xlu0 %v4820_v44, %s4446_s27  ;;  %1181 = vrot.lane.b32.xlu1 %v4820_v44, %s4447_s28 }
 0x596   :  { %1337 = vrot.lane.b32.xlu0 %v4820_v44, %s4448_s29  ;;  %1183 = vrot.lane.b32.xlu1 %v4826_v49, %s4447_s28 }
 0x59a   :  { %1421 = vrot.lane.b32.xlu0 %v4820_v44, %s4449_s30  ;;  %1175 = vrot.lane.b32.xlu1 %v4826_v49, %s4446_s27 }
 0x59e   :  { %1581 = vrot.lane.b32.xlu0 %v4820_v44, %s4450_s14  ;;  %1339 = vrot.lane.b32.xlu1 %v4826_v49, %s4448_s29 }
 0x5a2   :  { %1665 = vrot.lane.b32.xlu0 %v4820_v44, %s4451_s15  ;;  %1423 = vrot.lane.b32.xlu1 %v4826_v49, %s4449_s30 }
 0x5a6   :  { %1749 = vrot.lane.b32.xlu0 %v4820_v44, %s4452_s16  ;;  %1583 = vrot.lane.b32.xlu1 %v4826_v49, %s4450_s14 }
 0x5aa   :  { %1833 = vrot.lane.b32.xlu0 %v4820_v44, %s4453_s17  ;;  %1667 = vrot.lane.b32.xlu1 %v4826_v49, %s4451_s15 }
 0x5ae   :  { %1919 = vperm.xlu0 %4401, %v50_v50   ;;  %1751 = vrot.lane.b32.xlu1 %v4826_v49, %s4452_s16 }
 0x5b2   :  { %1835 = vrot.lane.b32.xlu1 %v4826_v49, %s4453_s17  ;;  %2211 = vrot.lane.b32.xlu0 %v4862_v51, %s4447_s28 }
 0x5b6   :  { %2213 = vrot.lane.b32.xlu0 %v4868_v53, %s4447_s28 }
 0x5ba   :  { %2203 = vrot.lane.b32.xlu0 %v4862_v51, %s4446_s27 }
 0x5be   :  { %2205 = vrot.lane.b32.xlu0 %v4868_v53, %s4446_s27 }
 0x5c2   :  { %2373 = vrot.lane.b32.xlu0 %v4862_v51, %s4448_s29 }
 0x5c6   :  { %2375 = vrot.lane.b32.xlu0 %v4868_v53, %s4448_s29 }
 0x5ca   :  { %2460 = vrot.lane.b32.xlu0 %v4862_v51, %s4449_s30 }
 0x5ce   :  { %2462 = vrot.lane.b32.xlu0 %v4868_v53, %s4449_s30 }
 0x5d2   :  { %2624 = vrot.lane.b32.xlu0 %v4862_v51, %s4450_s14 }
 0x5d6   :  { %2711 = vrot.lane.b32.xlu0 %v4862_v51, %s4451_s15 }
 0x5da   :  { %2713 = vrot.lane.b32.xlu0 %v4868_v53, %s4451_s15 }
 0x5de   :  { %2798 = vrot.lane.b32.xlu0 %v4862_v51, %s4452_s16 }
 0x5e2   :  { %2800 = vrot.lane.b32.xlu0 %v4868_v53, %s4452_s16 }
 0x5e6   :  { %2887 = vrot.lane.b32.xlu0 %v4868_v53, %s4453_s17 }
 0x604   :  { %v1182_v55 = vpop.permute.xlu1 %1181  ;;  %v1174_v56 = vpop.permute.xlu0 %1173 }
 0x608   :  { %v1184_v57 = vpop.permute.xlu1 %1183  ;;  %v1338_v13 = vpop.permute.xlu0 %1337 }
 0x609   :  { %v1185_v58 = vsel %vm117_vm1, %v1182_v55, %v1184_v57  ;;  %v1186_v60 = vsel %vm117_vm1, %v1184_v57, %v1182_v55 }
 0x60a   :  { %v1187_v62 = vmul.f32 %v1186_v60, %v4594_v15  ;;  %v1188_v63 = vmul.f32 %v1185_v58, %v4597_v16 }
 0x60c   :  { %1192 = vmatprep.subr.mxu1 %v1188_v63  ;;  %v1176_v5 = vpop.permute.xlu1 %1175  ;;  %v1422_v27 = vpop.permute.xlu0 %1421  ;;  %v4964_v63 = vld [vmem:[%s5319_s6 + $0x20] sm:$0xff] }
 0x60d   :  { %v1177_v8 = vsel %vm100_vm0, %v1174_v56, %v1176_v5  ;;  %v1178_v9 = vsel %vm100_vm0, %v1176_v5, %v1174_v56  ;;  %1193 = vmatpush1.msra.mxu1 %v1187_v62  ;;  %v4950_v56 = vld [vmem:[%s5319_s6 + $0x18] sm:$0xff] }
 0x60e   :  { %v1179_v17 = vmul.f32 %v1178_v9, %v4601_v18  ;;  %v1180_v19 = vmul.f32 %v1177_v8, %v4591_v14  ;;  %4202 = vmatmul.mubr.msk.f32.vlgmr.msra.gmra.mrb[4].mxu1 %vm981_vm11, %v4905_v4 }
 0x60f   :  { %1330 = vmatprep.mubr.f32.mxu1 %v4445_v1 }
 0x610   :  { %1266 = vmatprep.subr.mxu1 %v1180_v19  ;;  %v1340_v21 = vpop.permute.xlu1 %1339  ;;  %v1582_v50 = vpop.permute.xlu0 %1581  ;;  %v4978_v19 = vld [vmem:[%s5319_s6 + $0x28] sm:$0xff] }
 0x611   :  { %v1341_v22 = vsel %vm296_vm3, %v1338_v13, %v1340_v21  ;;  %1267 = vmatpush1.msra.mxu1 %v1179_v17  ;;  %v1342_v11 = vsel %vm296_vm3, %v1340_v21, %v1338_v13 }
 0x612   :  { %v1344_v24 = vmul.f32 %v1341_v22, %v4616_v28  ;;  %v1343_v32 = vmul.f32 %v1342_v11, %v4636_v36 }
 0x614   :  { %1348 = vmatprep.subr.mxu1 %v1344_v24  ;;  %v1424_v29 = vpop.permute.xlu1 %1423 }
 0x615   :  { %v1425_v33 = vsel %vm395_vm5, %v1422_v27, %v1424_v29  ;;  %v1426_v40 = vsel %vm395_vm5, %v1424_v29, %v1422_v27 }
 0x616   :  { %v1428_v38 = vmul.f32 %v1425_v33, %v4643_v39  ;;  %4203 = vmatmul.mubr.msk.f32.vlgmr.msra.gmra.mrb[4].mxu1 %vm981_vm11, %v4924_v26  ;;  %v1427_v42 = vmul.f32 %v1426_v40, %v4658_v45 }
 0x617   :  { %1349 = vmatpush1.msra.mxu1 %v1343_v32  ;;  %1412 = vmatprep.mubr.f32.mxu1 %v4445_v1  ;;  %v4992_v32 = vld [vmem:[%s5319_s6 + $0x30] sm:$0xff] }
 0x618   :  { %1432 = vmatprep.subr.mxu1 %v1428_v38  ;;  %v1584_v47 = vpop.permute.xlu1 %1583 }
 0x619   :  { %v1586_v55 = vsel %vm574_vm6, %v1584_v47, %v1582_v50  ;;  %v1585_v60 = vsel %vm574_vm6, %v1582_v50, %v1584_v47  ;;  %v5013_v50 = vld [vmem:[%s5319_s6 + $0x40] sm:$0xff] }
 0x61a   :  { %v1588_v57 = vmul.f32 %v1586_v55, %v4679_v52  ;;  %v1587_v5 = vmul.f32 %v1585_v60, %v4696_v59 }
 0x61c   :  { %v1668_v58 = vpop.permute.xlu1 %1667 }
 0x61e   :  { %4204 = vmatmul.mubr.msk.f32.vlgmr.msra.gmra.mrb[4].mxu1 %vm981_vm11, %v4938_v41 }
 0x61f   :  { %1433 = vmatpush1.msra.mxu1 %v1427_v42  ;;  %1496 = vmatprep.mubr.f32.mxu1 %v4445_v1  ;;  %v5004_v42 = vld [vmem:[%s5319_s6 + $0x38] sm:$0xff] }
 0x620   :  { %1508 = vmatprep.subr.mxu1 %v4826_v49  ;;  %v1666_v49 = vpop.permute.xlu0 %1665  ;;  %v1752_v8 = vpop.permute.xlu1 %1751 }
 0x621   :  { %v1670_v62 = vsel %vm673_vm7, %v1668_v58, %v1666_v49  ;;  %v1669_v13 = vsel %vm673_vm7, %v1666_v49, %v1668_v58 }
 0x622   :  { %v1671_v21 = vmul.f32 %v1669_v13, %v4720_v12 }
 0x624   :  { %v1750_v9 = vpop.permute.xlu0 %1749  ;;  %v1836_v11 = vpop.permute.xlu1 %1835 }
 0x625   :  { %v1754_v17 = vsel %vm772_vm8, %v1752_v8, %v1750_v9  ;;  %v1753_v27 = vsel %vm772_vm8, %v1750_v9, %v1752_v8 }
 0x626   :  { %4205 = vmatmul.mubr.msk.f32.vlgmr.msra.gmra.mrb[4].mxu1 %vm981_vm11, %v4950_v56  ;;  %v1756_v22 = vmul.f32 %v1754_v17, %v4727_v6  ;;  %v1755_v33 = vmul.f32 %v1753_v27, %v4743_v23 }
 0x627   :  { %1509 = vmatpush1.msra.mxu1 %v4820_v44  ;;  %1572 = vmatprep.mubr.f32.mxu1 %v4445_v1  ;;  %v1672_v44 = vmul.f32 %v1670_v62, %v4703_v61 }
 0x628   :  { %1592 = vmatprep.subr.mxu1 %v1588_v57  ;;  %v1834_v24 = vpop.permute.xlu0 %1833 }
 0x629   :  { %v1838_v29 = vsel %vm871_vm9, %v1836_v11, %v1834_v24  ;;  %v1837_v40 = vsel %vm871_vm9, %v1834_v24, %v1836_v11 }
 0x62a   :  { %v1840_v38 = vmul.f32 %v4752_v25, %v1838_v29  ;;  %v1839_v47 = vmul.f32 %v4770_v31, %v1837_v40 }
 0x62d   :  { %v5018_v55 = vpop.permute.xlu0 %1919 }
 0x62e   :  { %4206 = vmatmul.mubr.msk.f32.vlgmr.msra.gmra.mrb[4].mxu1 %vm981_vm11, %v4964_v63 }
 0x62f   :  { %1593 = vmatpush1.msra.mxu1 %v1587_v5  ;;  %1656 = vmatprep.mubr.f32.mxu1 %v4445_v1 }
 0x630   :  { %1676 = vmatprep.subr.mxu1 %v1672_v44 }
 0x631   :  { %v2212_v57 = vpop.permute.xlu0 %2211 }
 0x635   :  { %v2214_v58 = vpop.permute.xlu0 %2213 }
 0x636   :  { %4207 = vmatmul.mubr.msk.f32.vlgmr.msra.gmra.mrb[4].mxu1 %vm981_vm11, %v4978_v19  ;;  %v2215_v49 = vsel %vm117_vm1, %v2212_v57, %v2214_v58  ;;  %v2216_v60 = vsel %vm117_vm1, %v2214_v58, %v2212_v57 }
 0x637   :  { %1677 = vmatpush1.msra.mxu1 %v1671_v21  ;;  %1740 = vmatprep.mubr.f32.mxu1 %v4445_v1  ;;  %v2217_v62 = vmul.f32 %v2216_v60, %v4594_v15  ;;  %v2218_v5 = vmul.f32 %v2215_v49, %v4597_v16 }
 0x638   :  { %1760 = vmatprep.subr.mxu1 %v1756_v22 }
 0x639   :  { %v2204_v44 = vpop.permute.xlu0 %2203 }
 0x63d   :  { %v2206_v8 = vpop.permute.xlu0 %2205 }
 0x63e   :  { %4208 = vmatmul.mubr.msk.f32.vlgmr.msra.gmra.mrb[4].mxu1 %vm981_vm11, %v4992_v32  ;;  %v2207_v9 = vsel %vm100_vm0, %v2204_v44, %v2206_v8  ;;  %v2208_v13 = vsel %vm100_vm0, %v2206_v8, %v2204_v44 }
 0x63f   :  { %1761 = vmatpush1.msra.mxu1 %v1755_v33  ;;  %1824 = vmatprep.mubr.f32.mxu1 %v4445_v1  ;;  %v2209_v17 = vmul.f32 %v2208_v13, %v4601_v18  ;;  %v2210_v21 = vmul.f32 %v2207_v9, %v4591_v14 }
 0x640   :  { %1844 = vmatprep.subr.mxu1 %v1840_v38 }
 0x641   :  { %v2374_v22 = vpop.permute.xlu0 %2373 }
 0x646   :  { %4209 = vmatmul.mubr.msk.f32.vlgmr.msra.gmra.mrb[4].mxu1 %vm981_vm11, %v5004_v42 }
 0x647   :  { %1845 = vmatpush1.msra.mxu1 %v1839_v47  ;;  %1908 = vmatprep.mubr.f32.mxu1 %v4445_v1 }
 0x648   :  { %4219 = vmatprep.subr.msk.mxu1 %vm134_vm2, %v2218_v5 }
 0x64e   :  { %4210 = vmatmul.mubr.msk.f32.vlgmr.msra.gmra.mrb[4].mxu1 %vm981_vm11, %v5013_v50 }
 0x64f   :  { %2289 = vmatprep.mubr.f32.mxu1 %v4445_v1  ;;  %4220 = vmatpush1.msk.msra.mxu1 %vm134_vm2, %v2217_v62 }
 0x650   :  { %4222 = vmatprep.subr.msk.mxu1 %vm134_vm2, %v2210_v21 }
 0x652   :  { %4221 = vmatmul.mubr.msk.f32.vlgmr.msra.gmra.mrb[6].mxu1 %vm130_vm4, %v4622_v30  ;;  %v2376_v30 = vpop.permute.xlu0 %2375 }
 0x653   :  { %2366 = vmatprep.mubr.f32.mxu1 %v4445_v1  ;;  %4223 = vmatpush1.msk.msra.mxu1 %vm134_vm2, %v2209_v17  ;;  %v2377_v11 = vsel %vm296_vm3, %v2374_v22, %v2376_v30  ;;  %v2378_v24 = vsel %vm296_vm3, %v2376_v30, %v2374_v22 }
 0x654   :  { %v2379_v27 = vmul.f32 %v2378_v24, %v4636_v36  ;;  %v2380_v29 = vmul.f32 %v2377_v11, %v4616_v28 }
 0x656   :  { %v2461_v33 = vpop.permute.xlu0 %2460  ;;  %4225 = vmatprep.subr.msk.mxu1 %vm134_vm2, %v2380_v29 }
 0x65a   :  { %4224 = vmatmul.mubr.msk.f32.vlgmr.msra.gmra.mrb[6].mxu1 %vm130_vm4, %v4651_v43  ;;  %v2463_v43 = vpop.permute.xlu0 %2462 }
 0x65b   :  { %2451 = vmatprep.mubr.f32.mxu1 %v4445_v1  ;;  %4226 = vmatpush1.msk.msra.mxu1 %vm134_vm2, %v2379_v27  ;;  %v2464_v38 = vsel %vm395_vm5, %v2461_v33, %v2463_v43  ;;  %v2465_v40 = vsel %vm395_vm5, %v2463_v43, %v2461_v33 }
 0x65c   :  { %v2466_v47 = vmul.f32 %v2465_v40, %v4658_v45  ;;  %v2467_v57 = vmul.f32 %v2464_v38, %v4643_v39 }
 0x65e   :  { %4228 = vmatprep.subr.msk.mxu1 %vm134_vm2, %v2467_v57  ;;  %v2625_v62 = vpop.permute.xlu0 %2624 }
 0x662   :  { %4227 = vmatmul.mubr.msk.f32.vlgmr.msra.gmra.mrb[6].mxu1 %vm130_vm4, %v4668_v48 }
 0x663   :  { %2538 = vmatprep.mubr.f32.mxu1 %v4445_v1  ;;  %4229 = vmatpush1.msk.msra.mxu1 %vm134_vm2, %v2466_v47 }
 0x664   :  { %4231 = vmatprep.subr.msk.mxu1 %vm134_vm2, %v4868_v53 }
 0x66a   :  { %4230 = vmatmul.mubr.msk.f32.vlgmr.msra.gmra.mrb[6].mxu1 %vm130_vm4, %v4686_v54 }
 0x66b   :  { %4232 = vmatpush1.msk.msra.mxu1 %vm134_vm2, %v4862_v51  ;;  %2615 = vmatprep.mubr.f32.mxu1 %v4445_v1 }
 0x672   :  { %4233 = vmatmul.mubr.msk.f32.vlgmr.msra.gmra.mrb[6].mxu1 %vm130_vm4, %v4711_v3  ;;  %v2712_v3 = vpop.permute.xlu0 %2711 }
 0x673   :  { %2702 = vmatprep.mubr.f32.mxu1 %v4445_v1 }
 0x676   :  { %v2714_v5 = vpop.permute.xlu0 %2713 }
 0x677   :  { %v2716_v13 = vsel %vm673_vm7, %v2714_v5, %v2712_v3  ;;  %v2715_v21 = vsel %vm673_vm7, %v2712_v3, %v2714_v5 }
 0x678   :  { %v2718_v29 = vmul.f32 %v2716_v13, %v4703_v61  ;;  %v2717_v33 = vmul.f32 %v2715_v21, %v4720_v12 }
 0x67a   :  { %v2799_v44 = vpop.permute.xlu0 %2798 }
 0x67e   :  { %v2801_v9 = vpop.permute.xlu0 %2800 }
 0x67f   :  { %v2803_v11 = vsel %vm772_vm8, %v2801_v9, %v2799_v44  ;;  %v2802_v47 = vsel %vm772_vm8, %v2799_v44, %v2801_v9 }
 0x680   :  { %v2805_v43 = vmul.f32 %v2803_v11, %v4727_v6 }
 0x682   :  { %v2888_v38 = vpop.permute.xlu0 %2887 }
 0x721   :  { %v1910_v48 = vpop.f32.mrb[4].mxu1 }
 0x722   :  { %v5072_v58 = vadd.f32 %v5018_v55, %v1910_v48  ;;  %v1912_v49 = vpop.f32.mrb[5].mxu1  ;;  %v2804_v48 = vmul.f32 %v2802_v47, %v4743_v23 }
 0x723   :  { %v1923_v54 = vadd.f32 %v5018_v55, %v1912_v49 }
 0x725   :  { %v1924_v60 = vadd.f32 %v1923_v54, %v5072_v58 }
 0x727   :  { %1925 = vadd.xlane.f32.xlu1 %v1924_v60 }
 0x738   :  { %2626 = vrot.lane.b32.xlu1 %v4868_v53, %s4450_s14 }
 0x73c   :  { %2885 = vrot.lane.b32.xlu1 %v4862_v51, %s4453_s17 }
 0x7b4   :  { %v1926_v8 = vpop.xlane.xlu1 %1925 }
 0x7b5   :  { %4297 = vmatpush3.msra.mxu0 %v1926_v8 }
 0x7b6   :  { %4299 = vmatmul.mubr.msk.f32.vlgmr.msra.gmra.mrb[2].mxu0 %vm981_vm11, %v4804_v46  ;;  %4301 = vmatprep.subr.mxu0 %v4445_v1 }
 0x7b7   :  { %4303 = vmatprep.mubr.msk.f32.mxu0 %vm4455_vm10, %v4445_v1 }
 0x7b8   :  { %v2627_v17 = vpop.permute.xlu1 %2626 }
 0x7b9   :  { %v2628_v22 = vsel %vm574_vm6, %v2625_v62, %v2627_v17  ;;  %v2629_v30 = vsel %vm574_vm6, %v2627_v17, %v2625_v62 }
 0x7ba   :  { %v2630_v24 = vmul.f32 %v2628_v22, %v4696_v59  ;;  %v2631_v27 = vmul.f32 %v2629_v30, %v4679_v52 }
 0x7bc   :  { %4234 = vmatprep.subr.msk.mxu1 %vm134_vm2, %v2631_v27  ;;  %v2886_v40 = vpop.permute.xlu1 %2885 }
 0x7bd   :  { %4235 = vmatpush1.msk.msra.mxu1 %vm134_vm2, %v2630_v24  ;;  %v2890_v57 = vsel %vm871_vm9, %v2888_v38, %v2886_v40  ;;  %v2889_v49 = vsel %vm871_vm9, %v2886_v40, %v2888_v38 }
 0x7be   :  { %4236 = vmatmul.mubr.msk.f32.vlgmr.msra.gmra.mrb[6].mxu1 %vm130_vm4, %v4735_v20  ;;  %4237 = vmatprep.subr.msk.mxu1 %vm134_vm2, %v2718_v29  ;;  %v2892_v20 = vmul.f32 %v4752_v25, %v2890_v57  ;;  %v2891_v60 = vmul.f32 %v4770_v31, %v2889_v49  ;;  %v4246_v29 = vld [vmem:[%s5316_s4 + $0x8] sm:$0xff] }
 0x7bf   :  { %4238 = vmatpush1.msk.msra.mxu1 %vm134_vm2, %v2717_v33  ;;  %2789 = vmatprep.mubr.f32.mxu1 %v4445_v1  ;;  %v4247_v33 = vld [vmem:[%s5317_s5 + $0x8] sm:$0xff] }
 0x7c0   :  { %4240 = vmatprep.subr.msk.mxu1 %vm134_vm2, %v2805_v43 }
 0x7c6   :  { %4239 = vmatmul.mubr.msk.f32.vlgmr.msra.gmra.mrb[6].mxu1 %vm130_vm4, %v4760_v10 }
 0x7c7   :  { %4241 = vmatpush1.msk.msra.mxu1 %vm134_vm2, %v2804_v48  ;;  %2876 = vmatprep.mubr.f32.mxu1 %v4445_v1 }
 0x7c8   :  { %4243 = vmatprep.subr.msk.mxu1 %vm134_vm2, %v2892_v20 }
 0x7ce   :  { %4242 = vmatmul.mubr.msk.f32.vlgmr.msra.gmra.mrb[6].mxu1 %vm130_vm4, %v4779_v34 }
 0x7cf   :  { %4244 = vmatpush1.msk.msra.mxu1 %vm134_vm2, %v2891_v60  ;;  %2963 = vmatprep.mubr.f32.mxu1 %v4445_v1 }
 0x7d0   :  { %4316 = vmatprep.subr.mxu1 %v4445_v1 }
 0x7d6   :  { %4245 = vmatmul.mubr.msk.f32.vlgmr.msra.gmra.mrb[6].mxu1 %vm130_vm4, %v4789_v35 }
 0x7d7   :  { %4318 = vmatprep.mubr.msk.f32.mxu1 %vm4455_vm10, %v4445_v1 }
 0x889   :  { %v1993_v10 = vpop.f32.mrb[2].mxu0 }
 0x88a   :  { %1999 = vperm.xlu1 %4402, %v1993_v10   ;;  %v4300_v62 = vpop.f32.mrb[3].mxu0 }
 0x8a9   :  { %v2965_v3 = vpop.f32.mrb[6].mxu1 }
 0x8aa   :  { %v2972_v5 = vadd.f32 %v2965_v3, %v4793_v37  ;;  %v2967_v44 = vpop.f32.mrb[7].mxu1 }
 0x8ab   :  { %v2973_v34 = vadd.f32 %v2967_v44, %v4793_v37  ;;  %v5152_v37 = vld [vmem:[%s5320_s11] sm:$0xff] }
 0x8ad   :  { %v2980_v8 = vadd.f32 %v2973_v34, %v2972_v5 }
 0x8af   :  { %2981 = vadd.xlane.f32.xlu1 %v2980_v8 }
 0x909   :  { %v2000_v9 = vpop.permute.xlu1 %1999 }
 0x90a   :  { %v5134_v13 = vsub.f32 %v5072_v58, %v2000_v9  ;;  %v5136_v17 = vsub.f32 %v1923_v54, %v2000_v9 }
 0x90c   :  { %v2004_v35 = vmul.f32 %v5134_v13, %v5134_v13  ;;  %v2005_v21 = vmul.f32 %v5136_v17, %v5136_v17 }
 0x90e   :  { %v2006_v22 = vadd.f32 %v2005_v21, %v2004_v35 }
 0x910   :  { %2007 = vadd.xlane.f32.xlu0 %v2006_v22 }
 0x93c   :  { %v2982_v58 = vpop.xlane.xlu1 %2981 }
 0x99d   :  { %v2008_v30 = vpop.xlane.xlu0 %2007 }
 0x99e   :  { %4302 = vmatpush3.msra.mxu0 %v2008_v30 }
 0x99f   :  { %4304 = vmatmul.mubr.msk.f32.vlgmr.msra.gmra.mrb[4].mxu0 %vm981_vm11, %v4804_v46  ;;  %4215 = vmatprep.subr.msk.mxu0 %vm134_vm2, %v4539_v2 }
 0x9a0   :  { %4216 = vmatpush1.msk.msra.mxu0 %vm134_vm2, %v4529_v0  ;;  %2187 = vmatprep.mubr.f32.mxu0 %v4445_v1 }
 0x9a1   :  { %4306 = vmatprep.subr.mxu0 %v4445_v1 }
 0x9a3   :  { %4217 = vmatmul.mubr.msk.f32.vlgmr.msra.gmra.mrb[6].mxu0 %vm130_vm4, %v5152_v37 }
 0x9a4   :  { %4307 = vmatpush3.msra.mxu0 %v2982_v58  ;;  %4308 = vmatprep.mubr.msk.f32.mxu0 %vm4455_vm10, %v4445_v1 }
 0x9a5   :  { %4311 = vmatprep.subr.mxu0 %v4445_v1 }
 0x9a7   :  { %4309 = vmatmul.mubr.msk.f32.vlgmr.msra.gmra.mrb[8].mxu0 %vm981_vm11, %v4804_v46 }
 0x9a8   :  { %4313 = vmatprep.mubr.msk.f32.mxu0 %vm4455_vm10, %v4445_v1 }
 0xa72   :  { %v5164_v0 = vpop.f32.mrb[4].mxu0 }
 0xa73   :  { %v4305_v2 = vpop.f32.mrb[5].mxu0  ;;  %v2076_v7 = vadd.f32 1e-05, %v5164_v0 }
 0xa76   :  { %v5166_v54 = vpop.f32.mrb[6].mxu0 }
 0xa77   :  { %v5168_v11 = vpop.f32.mrb[7].mxu0 }
 0xa7a   :  { %v3049_v24 = vpop.f32.mrb[8].mxu0 }
 0xa7b   :  { %3055 = vperm.xlu0 %4401, %v3049_v24   ;;  %v4310_v27 = vpop.f32.mrb[9].mxu0 }
 0xa7f   :  { %3145 = vperm.xlu0 %4401, %v4246_v29  }
 0xa83   :  { %3152 = vperm.xlu0 %4401, %v4247_v33  }
 0xafa   :  { %v3056_v43 = vpop.permute.xlu0 %3055 }
 0xafb   :  { %v3058_v38 = vsub.f32 %v2972_v5, %v3056_v43  ;;  %v3059_v40 = vsub.f32 %v2973_v34, %v3056_v43 }
 0xafd   :  { %v3060_v47 = vmul.f32 %v3058_v38, %v3058_v38  ;;  %v3061_v57 = vmul.f32 %v3059_v40, %v3059_v40 }
 0xafe   :  { %v3146_v3 = vpop.permute.xlu0 %3145 }
 0xaff   :  { %v3062_v48 = vadd.f32 %v3061_v57, %v3060_v47 }
 0xb01   :  { %3063 = vadd.xlane.f32.xlu1 %v3062_v48 }
 0xb02   :  { %v3153_v35 = vpop.permute.xlu0 %3152 }
 0xb8e   :  { %v3064_v20 = vpop.xlane.xlu1 %3063 }
 0xb8f   :  { %4312 = vmatpush3.msra.mxu0 %v3064_v20 }
 0xb90   :  { %4314 = vmatmul.mubr.msk.f32.vlgmr.msra.gmra.mrb[10].mxu0 %vm981_vm11, %v4804_v46 }
 0xb91   :  { %3251 = vmatprep.mubr.f32.mxu0 %v4445_v1 }
 0xc63   :  { %v3131_v49 = vpop.f32.mrb[10].mxu0 }
 0xc64   :  { %v3132_v60 = vadd.f32 1e-05, %v3131_v49  ;;  %v4315_v10 = vpop.f32.mrb[11].mxu0 }
 0xc66   :  { %4415 = vrsqrt.f32 %v3132_v60 }
 0xc70   :  { %v4416_v62 = vpop.eup %4415 }
 0xc71   :  { %3138 = vperm.xlu1 %4402, %v4416_v62  }
 0xcf0   :  { %v3139_v5 = vpop.permute.xlu1 %3138 }
 0xcf1   :  { %v3141_v44 = vmul.f32 %v3139_v5, %v3058_v38  ;;  %v3142_v34 = vmul.f32 %v3139_v5, %v3059_v40 }
 0xcf3   :  { %v3148_v8 = vmul.f32 %v3146_v3, %v3141_v44  ;;  %v3149_v9 = vmul.f32 %v3146_v3, %v3142_v34 }
 0xcf5   :  { %v3155_v21 = vadd.f32 %v3153_v35, %v3148_v8  ;;  %v3156_v22 = vadd.f32 %v3153_v35, %v3149_v9 }
 0xcf7   :  { %v4250_v30 = vmul.f32 -1.442695, %v3155_v21  ;;  %v4251_v58 = vmul.f32 -1.442695, %v3156_v22 }
 0xcf9   :  { %4417 = vpow2.f32 %v4250_v30 }
 0xcfa   :  { %4419 = vpow2.f32 %v4251_v58 }
 0xd03   :  { %v4418_v2 = vpop.eup %4417 }
 0xd04   :  { %v4420_v24 = vpop.eup %4419  ;;  %v3163_v27 = vadd.f32 1.0, %v4418_v2 }
 0xd05   :  { %v3164_v29 = vadd.f32 1.0, %v4420_v24 }
 0xd06   :  { %4421 = vrcp.f32 %v3163_v27 }
 0xd07   :  { %4423 = vrcp.f32 %v3164_v29 }
 0xd08   :  { %4425 = vrsqrt.f32 %v2076_v7 }
 0xd10   :  { %v4422_v33 = vpop.eup %4421 }
 0xd11   :  { %v4424_v43 = vpop.eup %4423  ;;  %v3169_v47 = vmul.f32 %v4422_v33, %v3155_v21 }
 0xd12   :  { %v3170_v38 = vmul.f32 %v4424_v43, %v3156_v22 }
 0xd13   :  { %3179 = vrot.lane.b32.xlu1 %v3169_v47, %s4447_s28 }
 0xd14   :  { %3181 = vrot.lane.b32.xlu0 %v3170_v38, %s4447_s28 }
 0xd17   :  { %3171 = vrot.lane.b32.xlu1 %v3169_v47, %s4446_s27 }
 0xd18   :  { %3173 = vrot.lane.b32.xlu0 %v3170_v38, %s4446_s27 }
 0xd1b   :  { %3329 = vrot.lane.b32.xlu1 %v3169_v47, %s4448_s29 }
 0xd1c   :  { %3331 = vrot.lane.b32.xlu0 %v3170_v38, %s4448_s29 }
 0xd1f   :  { %3410 = vrot.lane.b32.xlu1 %v3169_v47, %s4449_s30 }
 0xd20   :  { %3412 = vrot.lane.b32.xlu0 %v3170_v38, %s4449_s30 }
 0xd23   :  { %3564 = vrot.lane.b32.xlu1 %v3169_v47, %s4450_s14 }
 0xd24   :  { %3566 = vrot.lane.b32.xlu0 %v3170_v38, %s4450_s14 }
 0xd27   :  { %3645 = vrot.lane.b32.xlu1 %v3169_v47, %s4451_s15 }
 0xd28   :  { %3647 = vrot.lane.b32.xlu0 %v3170_v38, %s4451_s15 }
 0xd2b   :  { %3726 = vrot.lane.b32.xlu1 %v3169_v47, %s4452_s16 }
 0xd2c   :  { %3728 = vrot.lane.b32.xlu0 %v3170_v38, %s4452_s16 }
 0xd2f   :  { %3807 = vrot.lane.b32.xlu1 %v3169_v47, %s4453_s17 }
 0xd30   :  { %3809 = vrot.lane.b32.xlu0 %v3170_v38, %s4453_s17 }
 0xd85   :  { %v3180_v40 = vpop.permute.xlu1 %3179 }
 0xd86   :  { %v3182_v57 = vpop.permute.xlu0 %3181 }
 0xd87   :  { %v3183_v48 = vsel %vm117_vm1, %v3180_v40, %v3182_v57  ;;  %v3184_v20 = vsel %vm117_vm1, %v3182_v57, %v3180_v40 }
 0xd88   :  { %v3185_v49 = vmul.f32 %v3184_v20, %v4594_v15  ;;  %v3186_v60 = vmul.f32 %v3183_v48, %v4597_v16 }
 0xd89   :  { %v3172_v10 = vpop.permute.xlu1 %3171 }
 0xd8a   :  { %v3174_v62 = vpop.permute.xlu0 %3173  ;;  %3187 = vmatprep.subr.mxu0 %v3186_v60 }
 0xd8b   :  { %v3175_v3 = vsel %vm100_vm0, %v3172_v10, %v3174_v62  ;;  %v3176_v5 = vsel %vm100_vm0, %v3174_v62, %v3172_v10  ;;  %3188 = vmatpush1.msra.mxu0 %v3185_v49 }
 0xd8c   :  { %v3177_v44 = vmul.f32 %v3176_v5, %v4601_v18  ;;  %v3178_v34 = vmul.f32 %v3175_v3, %v4591_v14  ;;  %4252 = vmatmul.mubr.msk.f32.vlgmr.msra.gmra.mrb[12].mxu0 %vm981_vm11, %v4905_v4 }
 0xd8d   :  { %v3330_v15 = vpop.permute.xlu1 %3329  ;;  %3322 = vmatprep.mubr.f32.mxu0 %v4445_v1 }
 0xd8e   :  { %v3332_v16 = vpop.permute.xlu0 %3331  ;;  %3258 = vmatprep.subr.mxu0 %v3178_v34 }
 0xd8f   :  { %v3333_v8 = vsel %vm296_vm3, %v3330_v15, %v3332_v16  ;;  %3259 = vmatpush1.msra.mxu0 %v3177_v44  ;;  %v3334_v9 = vsel %vm296_vm3, %v3332_v16, %v3330_v15 }
 0xd90   :  { %v3336_v35 = vmul.f32 %v3333_v8, %v4616_v28  ;;  %v3335_v14 = vmul.f32 %v3334_v9, %v4636_v36 }
 0xd91   :  { %v3411_v18 = vpop.permute.xlu1 %3410 }
 0xd92   :  { %v3413_v21 = vpop.permute.xlu0 %3412  ;;  %3337 = vmatprep.subr.mxu0 %v3336_v35 }
 0xd93   :  { %v3414_v4 = vsel %vm395_vm5, %v3411_v18, %v3413_v21  ;;  %v3415_v28 = vsel %vm395_vm5, %v3413_v21, %v3411_v18 }
 0xd94   :  { %v3417_v22 = vmul.f32 %v3414_v4, %v4643_v39  ;;  %4253 = vmatmul.mubr.msk.f32.vlgmr.msra.gmra.mrb[12].mxu0 %vm981_vm11, %v4924_v26  ;;  %v3416_v30 = vmul.f32 %v3415_v28, %v4658_v45 }
 0xd95   :  { %3338 = vmatpush1.msra.mxu0 %v3335_v14  ;;  %3401 = vmatprep.mubr.f32.mxu0 %v4445_v1  ;;  %v3565_v39 = vpop.permute.xlu1 %3564 }
 0xd96   :  { %3418 = vmatprep.subr.mxu0 %v3417_v22  ;;  %v3567_v36 = vpop.permute.xlu0 %3566 }
 0xd97   :  { %v3569_v26 = vsel %vm574_vm6, %v3567_v36, %v3565_v39 }
 0xd98   :  { %v3571_v58 = vmul.f32 %v3569_v26, %v4679_v52 }
 0xd99   :  { %v3646_v2 = vpop.permute.xlu1 %3645 }
 0xd9a   :  { %v3648_v45 = vpop.permute.xlu0 %3647 }
 0xd9b   :  { %v3650_v24 = vsel %vm673_vm7, %v3648_v45, %v3646_v2  ;;  %v3649_v33 = vsel %vm673_vm7, %v3646_v2, %v3648_v45 }
 0xd9c   :  { %4254 = vmatmul.mubr.msk.f32.vlgmr.msra.gmra.mrb[12].mxu0 %vm981_vm11, %v4938_v41  ;;  %v3568_v41 = vsel %vm574_vm6, %v3565_v39, %v3567_v36  ;;  %v3652_v29 = vmul.f32 %v3650_v24, %v4703_v61 }
 0xd9d   :  { %3419 = vmatpush1.msra.mxu0 %v3416_v30  ;;  %3482 = vmatprep.mubr.f32.mxu0 %v4445_v1  ;;  %v3570_v27 = vmul.f32 %v3568_v41, %v4696_v59 }
 0xd9e   :  { %3491 = vmatprep.subr.mxu0 %v3170_v38  ;;  %v3729_v52 = vpop.permute.xlu0 %3728 }
 0xda2   :  { %v3810_v61 = vpop.permute.xlu0 %3809 }
 0xda4   :  { %4255 = vmatmul.mubr.msk.f32.vlgmr.msra.gmra.mrb[12].mxu0 %vm981_vm11, %v4950_v56  ;;  %v3727_v56 = vpop.permute.xlu1 %3726 }
 0xda5   :  { %3492 = vmatpush1.msra.mxu0 %v3169_v47  ;;  %3555 = vmatprep.mubr.f32.mxu0 %v4445_v1  ;;  %v3731_v43 = vsel %vm772_vm8, %v3729_v52, %v3727_v56  ;;  %v3651_v47 = vmul.f32 %v3649_v33, %v4720_v12  ;;  %v3730_v38 = vsel %vm772_vm8, %v3727_v56, %v3729_v52 }
 0xda6   :  { %3572 = vmatprep.subr.mxu0 %v3571_v58  ;;  %v3733_v59 = vmul.f32 %v3731_v43, %v4727_v6  ;;  %v3732_v57 = vmul.f32 %v3730_v38, %v4743_v23 }
 0xdac   :  { %4256 = vmatmul.mubr.msk.f32.vlgmr.msra.gmra.mrb[12].mxu0 %vm981_vm11, %v4964_v63  ;;  %v3808_v63 = vpop.permute.xlu1 %3807 }
 0xdad   :  { %3573 = vmatpush1.msra.mxu0 %v3570_v27  ;;  %3636 = vmatprep.mubr.f32.mxu0 %v4445_v1  ;;  %v3812_v40 = vsel %vm871_vm9, %v3810_v61, %v3808_v63  ;;  %v3811_v6 = vsel %vm871_vm9, %v3808_v63, %v3810_v61 }
 0xdae   :  { %3653 = vmatprep.subr.mxu0 %v3652_v29  ;;  %v3814_v12 = vmul.f32 %v4752_v25, %v3812_v40 }
 0xdb4   :  { %4257 = vmatmul.mubr.msk.f32.vlgmr.msra.gmra.mrb[12].mxu0 %vm981_vm11, %v4978_v19  ;;  %v3813_v19 = vmul.f32 %v4770_v31, %v3811_v6  ;;  %v4426_v31 = vpop.eup %4425 }
 0xdb5   :  { %3654 = vmatpush1.msra.mxu0 %v3651_v47  ;;  %3717 = vmatprep.mubr.f32.mxu0 %v4445_v1 }
 0xdb6   :  { %3734 = vmatprep.subr.mxu0 %v3733_v59 }
 0xdbc   :  { %4258 = vmatmul.mubr.msk.f32.vlgmr.msra.gmra.mrb[12].mxu0 %vm981_vm11, %v4992_v32 }
 0xdbd   :  { %3735 = vmatpush1.msra.mxu0 %v3732_v57  ;;  %3798 = vmatprep.mubr.f32.mxu0 %v4445_v1 }
 0xdbe   :  { %3815 = vmatprep.subr.mxu0 %v3814_v12 }
 0xdc4   :  { %4259 = vmatmul.mubr.msk.f32.vlgmr.msra.gmra.mrb[12].mxu0 %vm981_vm11, %v5004_v42  ;;  %v51_v42 = vld [vmem:[%s5321_s8] sm:$0xff] }
 0xdc5   :  { %3816 = vmatpush1.msra.mxu0 %v3813_v19  ;;  %3879 = vmatprep.mubr.f32.mxu0 %v4445_v1 }
 0xdcc   :  { %4260 = vmatmul.mubr.msk.f32.vlgmr.msra.gmra.mrb[12].mxu0 %vm981_vm11, %v5013_v50  ;;  %v52_v50 = vld [vmem:[%s5322_s9] sm:$0xff] }
 0xe9f   :  { %v3881_v23 = vpop.f32.mrb[12].mxu0 }
 0xea0   :  { %v3888_v25 = vadd.f32 %v3881_v23, %v5018_v55  ;;  %v3883_v32 = vpop.f32.mrb[13].mxu0 }
 0xea1   :  { %v3889_v48 = vadd.f32 %v3883_v32, %v5018_v55 }
 0xea3   :  { %v3890_v20 = vadd.f32 %v3889_v48, %v3888_v25 }
 0xea5   :  { %3891 = vadd.xlane.f32.xlu1 %v3890_v20 }
 0xeb6   :  { %2082 = vperm.xlu1 %4402, %v4426_v31  }
 0xeba   :  { %2089 = vperm.xlu1 %4402, %v51_v42  }
 0xebe   :  { %2096 = vperm.xlu1 %4402, %v52_v50  }
 0xf32   :  { %v3892_v49 = vpop.xlane.xlu1 %3891 }
 0xf33   :  { %4317 = vmatpush3.msra.mxu1 %v3892_v49 }
 0xf34   :  { %4319 = vmatmul.mubr.msk.f32.vlgmr.msra.gmra.mrb[8].mxu1 %vm981_vm11, %v4804_v46  ;;  %4321 = vmatprep.subr.mxu1 %v4445_v1 }
 0xf35   :  { %4323 = vmatprep.mubr.msk.f32.mxu1 %vm4455_vm10, %v4445_v1 }
 0xf36   :  { %v2083_v18 = vpop.permute.xlu1 %2082 }
 0xf37   :  { %v2086_v21 = vmul.f32 %v2083_v18, %v5136_v17 }
0x1007   :  { %v3959_v55 = vpop.f32.mrb[8].mxu1 }
0x1008   :  { %3965 = vperm.xlu0 %4401, %v3959_v55   ;;  %v4320_v0 = vpop.f32.mrb[9].mxu1 }
0x1087   :  { %v3966_v60 = vpop.permute.xlu0 %3965 }
0x1088   :  { %v3968_v10 = vsub.f32 %v3888_v25, %v3966_v60  ;;  %v3969_v62 = vsub.f32 %v3889_v48, %v3966_v60 }
0x108a   :  { %v3970_v3 = vmul.f32 %v3968_v10, %v3968_v10  ;;  %v3971_v5 = vmul.f32 %v3969_v62, %v3969_v62 }
0x108c   :  { %v3972_v44 = vadd.f32 %v3971_v5, %v3970_v3 }
0x108e   :  { %3973 = vadd.xlane.f32.xlu0 %v3972_v44 }
0x111b   :  { %v3974_v34 = vpop.xlane.xlu0 %3973 }
0x111c   :  { %4322 = vmatpush3.msra.mxu1 %v3974_v34 }
0x111d   :  { %4324 = vmatmul.mubr.msk.f32.vlgmr.msra.gmra.mrb[10].mxu1 %vm981_vm11, %v4804_v46  ;;  %4265 = vmatprep.subr.msk.mxu1 %vm134_vm2, %v4868_v53  ;;  %v88_v46 = vld [vmem:[%s5323_s12] sm:$0xff] }
0x111e   :  { %4266 = vmatpush1.msk.msra.mxu1 %vm134_vm2, %v4862_v51  ;;  %4135 = vmatprep.mubr.f32.mxu1 %v4445_v1  ;;  %v2090_v51 = vpop.permute.xlu1 %2089  ;;  %v2085_v1 = vmul.f32 %v2083_v18, %v5134_v13 }
0x111f   :  { %v2093_v4 = vmul.f32 %v2090_v51, %v2086_v21 }
0x1120   :  { %v2092_v14 = vmul.f32 %v2090_v51, %v2085_v1 }
0x1121   :  { %4267 = vmatmul.mubr.msk.f32.vlgmr.msra.gmra.mrb[12].mxu1 %vm130_vm4, %v5152_v37 }
0x1122   :  { %v2097_v37 = vpop.permute.xlu1 %2096 }
0x1123   :  { %v2099_v22 = vadd.f32 %v2097_v37, %v2092_v14  ;;  %v2100_v28 = vadd.f32 %v2097_v37, %v2093_v4 }
0x1125   :  { %v4213_v30 = vmul.f32 -1.442695, %v2099_v22  ;;  %v4214_v36 = vmul.f32 -1.442695, %v2100_v28 }
0x11f0   :  { %v4041_v15 = vpop.f32.mrb[10].mxu1 }
0x11f1   :  { %v4042_v16 = vadd.f32 1e-05, %v4041_v15  ;;  %v4325_v8 = vpop.f32.mrb[11].mxu1 }
0x11f3   :  { %4427 = vrsqrt.f32 %v4042_v16 }
0x11f4   :  { %v4137_v35 = vpop.f32.mrb[12].mxu1  ;;  %4429 = vpow2.f32 %v4213_v30 }
0x11f5   :  { %v4139_v53 = vpop.f32.mrb[13].mxu1  ;;  %4431 = vpow2.f32 %v4214_v36 }
0x11fd   :  { %v4428_v9 = vpop.eup %4427 }
0x11fe   :  { %4048 = vperm.xlu0 %4401, %v4428_v9   ;;  %v4430_v39 = vpop.eup %4429 }
0x11ff   :  { %v4432_v26 = vpop.eup %4431  ;;  %v2107_v58 = vadd.f32 1.0, %v4430_v39 }
0x1200   :  { %v2108_v45 = vadd.f32 1.0, %v4432_v26 }
0x1201   :  { %4433 = vrcp.f32 %v2107_v58 }
0x1202   :  { %2117 = vperm.xlu0 %4401, %v88_v46   ;;  %4435 = vrcp.f32 %v2108_v45 }
0x120b   :  { %v4434_v2 = vpop.eup %4433 }
0x120c   :  { %v4436_v13 = vpop.eup %4435  ;;  %v2113_v52 = vmul.f32 %v4434_v2, %v2099_v22 }
0x120d   :  { %v2114_v56 = vmul.f32 %v4436_v13, %v2100_v28 }
0x127d   :  { %v4049_v41 = vpop.permute.xlu0 %4048 }
0x127e   :  { %v4051_v24 = vmul.f32 %v4049_v41, %v3968_v10  ;;  %v4052_v17 = vmul.f32 %v4049_v41, %v3969_v62 }
0x1280   :  { %v4053_v27 = vmul.f32 %v4051_v24, %v2090_v51  ;;  %v4054_v29 = vmul.f32 %v4052_v17, %v2090_v51 }
0x1281   :  { %v2118_v33 = vpop.permute.xlu0 %2117 }
0x1282   :  { %v4055_v43 = vadd.f32 %v4053_v27, %v2097_v37  ;;  %v4056_v47 = vadd.f32 %v4054_v29, %v2097_v37  ;;  %v2190_v59 = vadd.f32 %v5166_v54, %v2118_v33  ;;  %v2192_v61 = vadd.f32 %v5168_v11, %v2118_v33 }
0x1283   :  { %v4138_v32 = vadd.f32 %v4137_v35, %v2118_v33  ;;  %v4140_v20 = vadd.f32 %v4139_v53, %v2118_v33 }
0x1284   :  { %v4263_v63 = vmul.f32 -1.442695, %v4055_v43  ;;  %v4264_v38 = vmul.f32 -1.442695, %v4056_v47  ;;  %v2194_v40 = vadd.f32 %v2190_v59, %v2113_v52  ;;  %v2195_v57 = vadd.f32 %v2192_v61, %v2114_v56 }
0x1286   :  { %4437 = vpow2.f32 %v4263_v63  ;;  %2196 = vst [vmem:[%s5324_s13] sm:$0xff] %v2194_v40  ;;  %2197 = vst [vmem:[%s5324_s13 + $0x8] sm:$0xff] %v2195_v57 }
0x1287   :  { %4439 = vpow2.f32 %v4264_v38 }
0x1290   :  { %v4438_v12 = vpop.eup %4437 }
0x1291   :  { %v4440_v6 = vpop.eup %4439  ;;  %v4063_v19 = vadd.f32 1.0, %v4438_v12 }
0x1292   :  { %v4064_v54 = vadd.f32 1.0, %v4440_v6 }
0x1293   :  { %4441 = vrcp.f32 %v4063_v19 }
0x1294   :  { %4443 = vrcp.f32 %v4064_v54 }
0x129d   :  { %v4442_v11 = vpop.eup %4441 }
0x129e   :  { %v4444_v23 = vpop.eup %4443  ;;  %v4069_v25 = vmul.f32 %v4442_v11, %v4055_v43 }
0x129f   :  { %v4070_v48 = vmul.f32 %v4444_v23, %v4056_v47 }
0x12a0   :  { %v4142_v7 = vadd.f32 %v4138_v32, %v4069_v25 }
0x12a1   :  { %v4143_v31 = vadd.f32 %v4140_v20, %v4070_v48 }
0x12a2   :  { %4268 = vst [vmem:[%s5324_s13 + $0x10] sm:$0xff] %v4142_v7 }
0x12a3   :  { %4269 = vst [vmem:[%s5324_s13 + $0x18] sm:$0xff] %v4143_v31 }

</bundles_post_ra>
